<compile_context>
chip_gen: v6e
topology: v6e:2x2x1
jax: 0.10.0
libtpu: 0.0.40
codegen_flags: <defaults>
</compile_context>

<pallas_src>
import jax
import jax.numpy as jnp
from jax.experimental import pallas as pl
from jax.experimental.pallas import tpu as pltpu

CPAD = 128  # internal channel width (lane-dense)


def _pick_batch_tile(B, L, target_rows=512):
    """Largest divisor of B whose tile (TB*L rows) stays within ~target_rows while keeping the
    sublane rule (TB*L multiple of 8) satisfied; falls back to the full batch."""
    divisors = [d for d in range(1, B + 1) if B % d == 0]
    candidates = [d for d in divisors if d * L <= max(target_rows, L)]
    tb = max(candidates) if candidates else 1
    while tb < B and (tb * L) % 8 != 0:
        tb = min(d for d in divisors if d > tb)
    return tb


def make_tcn_fused_call(B, L, C_in, layer_cfgs, K, TB, cpad=CPAD):
    """pallas_call computing the whole TCN on a (B*L, cpad) activation slab, tiled over batch."""
    assert B % TB == 0, (B, TB)
    TBL = TB * L
    assert (TBL % 8 == 0) or (TB == B), "tile row count must satisfy the (8,128) sublane rule"
    n_in = 1 + sum(6 if c["has_downsample"] else 4 for c in layer_cfgs)

    def kernel(*refs):
        out_ref = refs[-1]
        x = refs[0][...]                                               # (TBL, C_in) f32, native width
        # Lane-pad to 128 in-register (one cheap VPU copy; avoids 32x HBM inflation in wrapper).
        a = jnp.concatenate(
            [x, jnp.zeros((TBL, cpad - C_in), jnp.float32)], axis=1)   # (TBL, cpad)
        # Time-within-sequence index of every row; the tile holds TB whole sequences, batch-major,
        # so the roll-based causal shift + this mask never leak across sequence boundaries.
        t_ids = jax.lax.broadcasted_iota(jnp.int32, (TBL, cpad), 0) % L

        def causal_dilated_conv(h, w_ref, b_ref, dilation):
            """(TBL, cpad) f32 -> (TBL, cpad) f32 via K accumulated 128-deep bf16 MXU dots."""
            pad = (K - 1) * dilation
            acc = None
            for k in range(K):
                s = pad - k * dilation                                 # left shift of this tap
                if s >= L:
                    continue                                           # tap sees only zero padding
                if s == 0:
                    tap = h
                else:
                    rolled = pltpu.roll(h, shift=s, axis=0)            # XLU sublane rotate
                    tap = jnp.where(t_ids < s, 0.0, rolled)            # zero causal region (f32)
                d = jnp.dot(tap.astype(jnp.bfloat16), w_ref[k],
                            preferred_element_type=jnp.float32)        # bf16 MXU, f32 accumulate
                acc = d if acc is None else acc + d
            if acc is None:
                acc = jnp.zeros((TBL, cpad), jnp.float32)
            return acc + b_ref[...]                                    # bias add in f32

        idx = 1
        for cfg in layer_cfgs:
            dil = cfg["dilation"]
            w1, b1, w2, b2 = refs[idx], refs[idx + 1], refs[idx + 2], refs[idx + 3]
            idx += 4
            # TemporalBlock 1: h_activ=None -> identity ; dropout (eval) -> identity.
            y1 = causal_dilated_conv(a, w1, b1, dil)
            # TemporalBlock 2.
            y2 = causal_dilated_conv(y1, w2, b2, dil)
            # Residual path: 1x1 conv only when channel counts differ; exact identity otherwise.
            if cfg["has_downsample"]:
                wd, bd = refs[idx], refs[idx + 1]
                idx += 2
                r = jnp.dot(a.astype(jnp.bfloat16), wd[...],
                            preferred_element_type=jnp.float32) + bd[...]
            else:
                r = a
            a = y2 + r
        out_ref[...] = a.astype(out_ref.dtype)                         # lane-dense 128-wide store

    # Input/output tiles advance with the batch-tile grid index; weights stay resident (index 0).
    in_specs = [pl.BlockSpec((TBL, C_in), lambda i: (i, 0))]
    w_spec = pl.BlockSpec((K, cpad, cpad), lambda i: (0, 0, 0))
    b_spec = pl.BlockSpec((1, cpad), lambda i: (0, 0))
    ds_spec = pl.BlockSpec((cpad, cpad), lambda i: (0, 0))
    for cfg in layer_cfgs:
        in_specs += [w_spec, b_spec, w_spec, b_spec]
        if cfg["has_downsample"]:
            in_specs += [ds_spec, b_spec]
    assert len(in_specs) == n_in

    # Explicit scoped-VMEM budget from actual buffer sizes (defaults are 16/32 MiB; v7x phys 64 MiB).
    weight_bytes = 0
    for cfg in layer_cfgs:
        weight_bytes += 2 * (K * cpad * cpad * 2 + cpad * 4)           # bf16 conv weights + f32 bias
        if cfg["has_downsample"]:
            weight_bytes += cpad * cpad * 2 + cpad * 4
    io_bytes = 2 * (TBL * C_in * 4 + TBL * cpad * 4)                   # double-buffered in/out tiles
    act_bytes = (K + 4) * TBL * cpad * 4                               # live f32 temporaries / layer
    vmem_limit = int(min(64 * 2 ** 20,
                         max(32 * 2 ** 20, 2 * (weight_bytes + io_bytes + act_bytes))))

    return pl.pallas_call(
        kernel,
        out_shape=jax.ShapeDtypeStruct((B * L, cpad), jnp.float32),
        grid_spec=pltpu.PrefetchScalarGridSpec(
            num_scalar_prefetch=0,
            grid=(B // TB,),
            in_specs=in_specs,
            out_specs=pl.BlockSpec((TBL, cpad), lambda i: (i, 0)),
        ),
        compiler_params=pltpu.CompilerParams(
            dimension_semantics=("parallel",),                          # megacore split on v7x
            vmem_limit_bytes=vmem_limit,
        ),
    )


def init_residual_block_params(key, C_in, C_out, K):
    """Deterministic parameter init mirroring the PyTorch module's shapes (native widths)."""
    k1, k2, k3, k4, k5, k6 = jax.random.split(key, 6)

    def conv_weight(k, cin, cout, ksz):
        # weight_norm direction v ~ N(0, 0.01), torch layout (cout, cin, ksz)
        v = 0.01 * jax.random.normal(k, (cout, cin, ksz), jnp.float32)
        g = jnp.sqrt(jnp.sum(v * v, axis=(1, 2), keepdims=True))        # per-out-channel norm
        w = g * v / jnp.maximum(g, 1e-12)                                # == v at init
        return jnp.transpose(w, (2, 1, 0))                               # -> (ksz, cin, cout)

    w1 = conv_weight(k1, C_in, C_out, K)
    bound1 = 1.0 / (C_in * K) ** 0.5
    b1 = jax.random.uniform(k2, (1, C_out), jnp.float32, -bound1, bound1)
    w2 = conv_weight(k3, C_out, C_out, K)
    bound2 = 1.0 / (C_out * K) ** 0.5
    b2 = jax.random.uniform(k4, (1, C_out), jnp.float32, -bound2, bound2)
    params = dict(w1=w1, b1=b1, w2=w2, b2=b2)
    if C_in != C_out:
        wd_t = 0.01 * jax.random.normal(k5, (C_out, C_in, 1), jnp.float32)
        params["wd"] = jnp.transpose(wd_t, (2, 1, 0))[0]                 # (C_in, C_out)
        bound_d = 1.0 / C_in ** 0.5
        params["bd"] = jax.random.uniform(k6, (1, C_out), jnp.float32, -bound_d, bound_d)
    return params


def pad_layer_params(params, C_in, C_out, K, has_downsample, cpad=CPAD):
    """Zero-pad channels to cpad lanes; store MXU weights in bf16 (f32 accumulation in-kernel)."""
    w1 = jnp.zeros((K, cpad, cpad), jnp.float32).at[:, :C_in, :C_out].set(
        params["w1"]).astype(jnp.bfloat16)
    b1 = jnp.zeros((1, cpad), jnp.float32).at[:, :C_out].set(params["b1"])
    w2 = jnp.zeros((K, cpad, cpad), jnp.float32).at[:, :C_out, :C_out].set(
        params["w2"]).astype(jnp.bfloat16)
    b2 = jnp.zeros((1, cpad), jnp.float32).at[:, :C_out].set(params["b2"])
    padded = dict(w1=w1, b1=b1, w2=w2, b2=b2)
    if has_downsample:
        padded["wd"] = jnp.zeros((cpad, cpad), jnp.float32).at[:C_in, :C_out].set(
            params["wd"]).astype(jnp.bfloat16)
        padded["bd"] = jnp.zeros((1, cpad), jnp.float32).at[:, :C_out].set(params["bd"])
    return padded


def build_tcn(key, input_dim, out_dim, h_dims, kernel_size, dilation_base, B, L, batch_tile=None):
    layer_dims = [input_dim] + list(h_dims) + [out_dim]
    n_layers = len(layer_dims) - 1
    keys = jax.random.split(key, n_layers)
    layers = []
    for index in range(n_layers):
        dilation = dilation_base ** index
        C_in, C_out = layer_dims[index], layer_dims[index + 1]
        has_ds = C_in != C_out
        params = init_residual_block_params(keys[index], C_in, C_out, kernel_size)
        padded = pad_layer_params(params, C_in, C_out, kernel_size, has_ds)
        layers.append(dict(dilation=dilation, C_in=C_in, C_out=C_out,
                           has_downsample=has_ds, params=params, padded=padded))
    TB = batch_tile if batch_tile is not None else _pick_batch_tile(B, L)
    call = make_tcn_fused_call(B, L, input_dim, layers, kernel_size, TB)
    return dict(call=call, layers=layers, out_dim=out_dim, K=kernel_size, B=B, L=L, TB=TB)


def tcn_forward(model, x_ncl):
    """PyTorch-style NCL in / NCL out; channels-last at native width, batch folded into rows."""
    B, C_in, L = x_ncl.shape
    x = jnp.transpose(x_ncl, (0, 2, 1)).reshape(B * L, C_in)            # no HBM lane pad
    args = [x]
    for lyr in model["layers"]:
        p = lyr["padded"]
        args += [p["w1"], p["b1"], p["w2"], p["b2"]]
        if lyr["has_downsample"]:
            args += [p["wd"], p["bd"]]
    out = model["call"](*args)                                           # (B*L, CPAD) f32
    out = out.reshape(B, L, CPAD)[:, :, :model["out_dim"]]
    return jnp.transpose(out, (0, 2, 1))                                 # (B, out_dim, L)


def tcn_reference(model, x_ncl, K):
    """Pure-JAX f32 reference with identical semantics (native channel widths), for verification."""
    x = jnp.transpose(x_ncl, (0, 2, 1))
    for lyr in model["layers"]:
        p, d = lyr["params"], lyr["dilation"]
        pad = (K - 1) * d
        L = x.shape[1]
        xp = jnp.pad(x, ((0, 0), (pad, 0), (0, 0)))
        y = sum(jnp.einsum("blc,cd->bld", xp[:, k * d:k * d + L, :], p["w1"][k])
                for k in range(K)) + p["b1"]
        yp = jnp.pad(y, ((0, 0), (pad, 0), (0, 0)))
        y2 = sum(jnp.einsum("blc,cd->bld", yp[:, k * d:k * d + L, :], p["w2"][k])
                 for k in range(K)) + p["b2"]
        if lyr["has_downsample"]:
            r = jnp.einsum("blc,cd->bld", x, p["wd"]) + p["bd"]
        else:
            r = x
        x = y2 + r
    return jnp.transpose(x, (0, 2, 1))


if __name__ == "__main__":
    # Small TCN: input_dim=4, h_dims=[8], out_dim=8, kernel_size=3, dilation_base=2.
    # B=4 with batch_tile=2 exercises the 2-step batch-tiled ("parallel") grid.
    B, C_in, L = 4, 4, 16
    input_dim, out_dim, h_dims = 4, 8, [8]
    kernel_size, dilation_base = 3, 2

    key = jax.random.PRNGKey(0)
    k_x, k_p = jax.random.split(key)
    x = jax.random.normal(k_x, (B, C_in, L), jnp.float32)                # PyTorch NCL layout

    model = build_tcn(k_p, input_dim, out_dim, h_dims, kernel_size, dilation_base,
                      B, L, batch_tile=2)

    out = jax.block_until_ready(tcn_forward(model, x))
    ref = jax.block_until_ready(tcn_reference(model, x, kernel_size))

    assert out.shape == (B, out_dim, L), out.shape
    # bf16 MXU operands with f32 accumulation -> tolerance loosened slightly vs pure-f32.
    assert jnp.allclose(out, ref, atol=1e-2, rtol=1e-2), float(jnp.max(jnp.abs(out - ref)))

    print("KERNEL_OK")
</pallas_src>

<mosaic_0001>
module attributes {stable_mosaic.version = 11 : i64} {
  func.func @kernel(%arg0: i32, %arg1: memref<32x4xf32, #tpu.memory_space<vmem>>, %arg2: memref<3x128x128xbf16, #tpu.memory_space<vmem>>, %arg3: memref<1x128xf32, #tpu.memory_space<vmem>>, %arg4: memref<3x128x128xbf16, #tpu.memory_space<vmem>>, %arg5: memref<1x128xf32, #tpu.memory_space<vmem>>, %arg6: memref<128x128xbf16, #tpu.memory_space<vmem>>, %arg7: memref<1x128xf32, #tpu.memory_space<vmem>>, %arg8: memref<3x128x128xbf16, #tpu.memory_space<vmem>>, %arg9: memref<1x128xf32, #tpu.memory_space<vmem>>, %arg10: memref<3x128x128xbf16, #tpu.memory_space<vmem>>, %arg11: memref<1x128xf32, #tpu.memory_space<vmem>>, %arg12: memref<32x128xf32, #tpu.memory_space<vmem>>) attributes {dimension_semantics = [#tpu.dimension_semantics<parallel>], iteration_bounds = array<i64: 2>, scalar_prefetch = 0 : i64, scratch_operands = 0 : i64, tpu.core_type = #tpu.core_type<tc>, window_params = [{transform_indices = @transform_0, window_bounds = array<i64: 32, 4>}, {pipeline_mode = #tpu.pipeline_mode<synchronous>, transform_indices = @transform_1, window_bounds = array<i64: 3, 128, 128>}, {pipeline_mode = #tpu.pipeline_mode<synchronous>, transform_indices = @transform_2, window_bounds = array<i64: 1, 128>}, {pipeline_mode = #tpu.pipeline_mode<synchronous>, transform_indices = @transform_3, window_bounds = array<i64: 3, 128, 128>}, {pipeline_mode = #tpu.pipeline_mode<synchronous>, transform_indices = @transform_4, window_bounds = array<i64: 1, 128>}, {pipeline_mode = #tpu.pipeline_mode<synchronous>, transform_indices = @transform_5, window_bounds = array<i64: 128, 128>}, {pipeline_mode = #tpu.pipeline_mode<synchronous>, transform_indices = @transform_6, window_bounds = array<i64: 1, 128>}, {pipeline_mode = #tpu.pipeline_mode<synchronous>, transform_indices = @transform_7, window_bounds = array<i64: 3, 128, 128>}, {pipeline_mode = #tpu.pipeline_mode<synchronous>, transform_indices = @transform_8, window_bounds = array<i64: 1, 128>}, {pipeline_mode = #tpu.pipeline_mode<synchronous>, transform_indices = @transform_9, window_bounds = array<i64: 3, 128, 128>}, {pipeline_mode = #tpu.pipeline_mode<synchronous>, transform_indices = @transform_10, window_bounds = array<i64: 1, 128>}, {transform_indices = @transform_11, window_bounds = array<i64: 32, 128>}]} {
    %c0 = arith.constant 0 : index
    %c0_0 = arith.constant 0 : index
    %0 = vector.load %arg1[%c0, %c0_0] : memref<32x4xf32, #tpu.memory_space<vmem>>, vector<32x4xf32>
    %cst = arith.constant 0.000000e+00 : f32
    %1 = vector.broadcast %cst : f32 to vector<32x124xf32>
    %2 = tpu.concatenate %0, %1 in 1 : vector<32x4xf32>, vector<32x124xf32> -> vector<32x128xf32>
    %3 = tpu.iota {dimensions = array<i32: 0>} : vector<32x128xi32>
    %c16_i32 = arith.constant 16 : i32
    %c0_i32 = arith.constant 0 : i32
    %4 = arith.cmpi eq, %c16_i32, %c0_i32 : i32
    %c1_i32 = arith.constant 1 : i32
    %5 = arith.select %4, %c1_i32, %c16_i32 : i32
    %6 = vector.broadcast %5 : i32 to vector<32x128xi32>
    %7 = arith.remsi %3, %6 : vector<32x128xi32>
    %c0_i32_1 = arith.constant 0 : i32
    %8 = vector.broadcast %c0_i32_1 : i32 to vector<32x128xi32>
    %9 = arith.cmpi ne, %7, %8 : vector<32x128xi32>
    %c0_i32_2 = arith.constant 0 : i32
    %10 = vector.broadcast %c0_i32_2 : i32 to vector<32x128xi32>
    %11 = arith.cmpi slt, %7, %10 : vector<32x128xi32>
    %c0_i32_3 = arith.constant 0 : i32
    %12 = arith.cmpi slt, %5, %c0_i32_3 : i32
    %13 = vector.broadcast %12 : i1 to vector<32x128xi1>
    %14 = vector.broadcast %13 : vector<32x128xi1> to vector<32x128xi1>
    %15 = arith.xori %11, %14 : vector<32x128xi1>
    %16 = arith.andi %15, %9 : vector<32x128xi1>
    %17 = vector.broadcast %5 : i32 to vector<32x128xi32>
    %18 = arith.addi %7, %17 : vector<32x128xi32>
    %19 = arith.select %16, %18, %7 : vector<32x128xi1>, vector<32x128xi32>
    %c2_i32 = arith.constant 2 : i32
    %20 = tpu.dynamic_rotate %2 by %c2_i32 dim 0 : vector<32x128xf32>, i32 -> vector<32x128xf32>
    %c2_i32_4 = arith.constant 2 : i32
    %21 = vector.broadcast %c2_i32_4 : i32 to vector<32x128xi32>
    %22 = arith.cmpi slt, %19, %21 : vector<32x128xi32>
    %cst_5 = arith.constant 0.000000e+00 : f32
    %23 = vector.broadcast %cst_5 : f32 to vector<32x128xf32>
    %24 = arith.select %22, %23, %20 : vector<32x128xi1>, vector<32x128xf32>
    %25 = arith.truncf %24 : vector<32x128xf32> to vector<32x128xbf16>
    %c0_6 = arith.constant 0 : index
    %c0_7 = arith.constant 0 : index
    %c0_8 = arith.constant 0 : index
    %26 = vector.load %arg2[%c0_6, %c0_7, %c0_8] : memref<3x128x128xbf16, #tpu.memory_space<vmem>>, vector<1x128x128xbf16>
    %27 = vector.shape_cast %26 : vector<1x128x128xbf16> to vector<128x128xbf16>
    %cst_9 = arith.constant dense<0.000000e+00> : vector<32x128xf32>
    %28 = tpu.matmul %25, %27, %cst_9 {dimension_numbers = #tpu.dot_dimension_numbers<[1], [0], [0], [1], [0, 0, 1, 1], [], []>} : vector<32x128xbf16>, vector<128x128xbf16>, vector<32x128xf32> -> vector<32x128xf32>
    %c1_i32_10 = arith.constant 1 : i32
    %29 = tpu.dynamic_rotate %2 by %c1_i32_10 dim 0 : vector<32x128xf32>, i32 -> vector<32x128xf32>
    %c1_i32_11 = arith.constant 1 : i32
    %30 = vector.broadcast %c1_i32_11 : i32 to vector<32x128xi32>
    %31 = arith.cmpi slt, %19, %30 : vector<32x128xi32>
    %cst_12 = arith.constant 0.000000e+00 : f32
    %32 = vector.broadcast %cst_12 : f32 to vector<32x128xf32>
    %33 = arith.select %31, %32, %29 : vector<32x128xi1>, vector<32x128xf32>
    %34 = arith.truncf %33 : vector<32x128xf32> to vector<32x128xbf16>
    %c1 = arith.constant 1 : index
    %c0_13 = arith.constant 0 : index
    %c0_14 = arith.constant 0 : index
    %35 = vector.load %arg2[%c1, %c0_13, %c0_14] : memref<3x128x128xbf16, #tpu.memory_space<vmem>>, vector<1x128x128xbf16>
    %36 = vector.shape_cast %35 : vector<1x128x128xbf16> to vector<128x128xbf16>
    %cst_15 = arith.constant dense<0.000000e+00> : vector<32x128xf32>
    %37 = tpu.matmul %34, %36, %cst_15 {dimension_numbers = #tpu.dot_dimension_numbers<[1], [0], [0], [1], [0, 0, 1, 1], [], []>} : vector<32x128xbf16>, vector<128x128xbf16>, vector<32x128xf32> -> vector<32x128xf32>
    %38 = arith.addf %28, %37 : vector<32x128xf32>
    %39 = arith.truncf %2 : vector<32x128xf32> to vector<32x128xbf16>
    %c2 = arith.constant 2 : index
    %c0_16 = arith.constant 0 : index
    %c0_17 = arith.constant 0 : index
    %40 = vector.load %arg2[%c2, %c0_16, %c0_17] : memref<3x128x128xbf16, #tpu.memory_space<vmem>>, vector<1x128x128xbf16>
    %41 = vector.shape_cast %40 : vector<1x128x128xbf16> to vector<128x128xbf16>
    %cst_18 = arith.constant dense<0.000000e+00> : vector<32x128xf32>
    %42 = tpu.matmul %39, %41, %cst_18 {dimension_numbers = #tpu.dot_dimension_numbers<[1], [0], [0], [1], [0, 0, 1, 1], [], []>} : vector<32x128xbf16>, vector<128x128xbf16>, vector<32x128xf32> -> vector<32x128xf32>
    %43 = arith.addf %38, %42 : vector<32x128xf32>
    %c0_19 = arith.constant 0 : index
    %c0_20 = arith.constant 0 : index
    %44 = vector.load %arg3[%c0_19, %c0_20] : memref<1x128xf32, #tpu.memory_space<vmem>>, vector<1x128xf32>
    %45 = vector.broadcast %44 : vector<1x128xf32> to vector<32x128xf32>
    %46 = arith.addf %43, %45 : vector<32x128xf32>
    %c2_i32_21 = arith.constant 2 : i32
    %47 = tpu.dynamic_rotate %46 by %c2_i32_21 dim 0 : vector<32x128xf32>, i32 -> vector<32x128xf32>
    %c2_i32_22 = arith.constant 2 : i32
    %48 = vector.broadcast %c2_i32_22 : i32 to vector<32x128xi32>
    %49 = arith.cmpi slt, %19, %48 : vector<32x128xi32>
    %cst_23 = arith.constant 0.000000e+00 : f32
    %50 = vector.broadcast %cst_23 : f32 to vector<32x128xf32>
    %51 = arith.select %49, %50, %47 : vector<32x128xi1>, vector<32x128xf32>
    %52 = arith.truncf %51 : vector<32x128xf32> to vector<32x128xbf16>
    %c0_24 = arith.constant 0 : index
    %c0_25 = arith.constant 0 : index
    %c0_26 = arith.constant 0 : index
    %53 = vector.load %arg4[%c0_24, %c0_25, %c0_26] : memref<3x128x128xbf16, #tpu.memory_space<vmem>>, vector<1x128x128xbf16>
    %54 = vector.shape_cast %53 : vector<1x128x128xbf16> to vector<128x128xbf16>
    %cst_27 = arith.constant dense<0.000000e+00> : vector<32x128xf32>
    %55 = tpu.matmul %52, %54, %cst_27 {dimension_numbers = #tpu.dot_dimension_numbers<[1], [0], [0], [1], [0, 0, 1, 1], [], []>} : vector<32x128xbf16>, vector<128x128xbf16>, vector<32x128xf32> -> vector<32x128xf32>
    %c1_i32_28 = arith.constant 1 : i32
    %56 = tpu.dynamic_rotate %46 by %c1_i32_28 dim 0 : vector<32x128xf32>, i32 -> vector<32x128xf32>
    %c1_i32_29 = arith.constant 1 : i32
    %57 = vector.broadcast %c1_i32_29 : i32 to vector<32x128xi32>
    %58 = arith.cmpi slt, %19, %57 : vector<32x128xi32>
    %cst_30 = arith.constant 0.000000e+00 : f32
    %59 = vector.broadcast %cst_30 : f32 to vector<32x128xf32>
    %60 = arith.select %58, %59, %56 : vector<32x128xi1>, vector<32x128xf32>
    %61 = arith.truncf %60 : vector<32x128xf32> to vector<32x128xbf16>
    %c1_31 = arith.constant 1 : index
    %c0_32 = arith.constant 0 : index
    %c0_33 = arith.constant 0 : index
    %62 = vector.load %arg4[%c1_31, %c0_32, %c0_33] : memref<3x128x128xbf16, #tpu.memory_space<vmem>>, vector<1x128x128xbf16>
    %63 = vector.shape_cast %62 : vector<1x128x128xbf16> to vector<128x128xbf16>
    %cst_34 = arith.constant dense<0.000000e+00> : vector<32x128xf32>
    %64 = tpu.matmul %61, %63, %cst_34 {dimension_numbers = #tpu.dot_dimension_numbers<[1], [0], [0], [1], [0, 0, 1, 1], [], []>} : vector<32x128xbf16>, vector<128x128xbf16>, vector<32x128xf32> -> vector<32x128xf32>
    %65 = arith.addf %55, %64 : vector<32x128xf32>
    %66 = arith.truncf %46 : vector<32x128xf32> to vector<32x128xbf16>
    %c2_35 = arith.constant 2 : index
    %c0_36 = arith.constant 0 : index
    %c0_37 = arith.constant 0 : index
    %67 = vector.load %arg4[%c2_35, %c0_36, %c0_37] : memref<3x128x128xbf16, #tpu.memory_space<vmem>>, vector<1x128x128xbf16>
    %68 = vector.shape_cast %67 : vector<1x128x128xbf16> to vector<128x128xbf16>
    %cst_38 = arith.constant dense<0.000000e+00> : vector<32x128xf32>
    %69 = tpu.matmul %66, %68, %cst_38 {dimension_numbers = #tpu.dot_dimension_numbers<[1], [0], [0], [1], [0, 0, 1, 1], [], []>} : vector<32x128xbf16>, vector<128x128xbf16>, vector<32x128xf32> -> vector<32x128xf32>
    %70 = arith.addf %65, %69 : vector<32x128xf32>
    %c0_39 = arith.constant 0 : index
    %c0_40 = arith.constant 0 : index
    %71 = vector.load %arg5[%c0_39, %c0_40] : memref<1x128xf32, #tpu.memory_space<vmem>>, vector<1x128xf32>
    %72 = vector.broadcast %71 : vector<1x128xf32> to vector<32x128xf32>
    %73 = arith.addf %70, %72 : vector<32x128xf32>
    %74 = arith.truncf %2 : vector<32x128xf32> to vector<32x128xbf16>
    %c0_41 = arith.constant 0 : index
    %c0_42 = arith.constant 0 : index
    %75 = vector.load %arg6[%c0_41, %c0_42] : memref<128x128xbf16, #tpu.memory_space<vmem>>, vector<128x128xbf16>
    %cst_43 = arith.constant dense<0.000000e+00> : vector<32x128xf32>
    %76 = tpu.matmul %74, %75, %cst_43 {dimension_numbers = #tpu.dot_dimension_numbers<[1], [0], [0], [1], [0, 0, 1, 1], [], []>} : vector<32x128xbf16>, vector<128x128xbf16>, vector<32x128xf32> -> vector<32x128xf32>
    %c0_44 = arith.constant 0 : index
    %c0_45 = arith.constant 0 : index
    %77 = vector.load %arg7[%c0_44, %c0_45] : memref<1x128xf32, #tpu.memory_space<vmem>>, vector<1x128xf32>
    %78 = vector.broadcast %77 : vector<1x128xf32> to vector<32x128xf32>
    %79 = arith.addf %76, %78 : vector<32x128xf32>
    %80 = arith.addf %73, %79 : vector<32x128xf32>
    %c4_i32 = arith.constant 4 : i32
    %81 = tpu.dynamic_rotate %80 by %c4_i32 dim 0 : vector<32x128xf32>, i32 -> vector<32x128xf32>
    %c4_i32_46 = arith.constant 4 : i32
    %82 = vector.broadcast %c4_i32_46 : i32 to vector<32x128xi32>
    %83 = arith.cmpi slt, %19, %82 : vector<32x128xi32>
    %cst_47 = arith.constant 0.000000e+00 : f32
    %84 = vector.broadcast %cst_47 : f32 to vector<32x128xf32>
    %85 = arith.select %83, %84, %81 : vector<32x128xi1>, vector<32x128xf32>
    %86 = arith.truncf %85 : vector<32x128xf32> to vector<32x128xbf16>
    %c0_48 = arith.constant 0 : index
    %c0_49 = arith.constant 0 : index
    %c0_50 = arith.constant 0 : index
    %87 = vector.load %arg8[%c0_48, %c0_49, %c0_50] : memref<3x128x128xbf16, #tpu.memory_space<vmem>>, vector<1x128x128xbf16>
    %88 = vector.shape_cast %87 : vector<1x128x128xbf16> to vector<128x128xbf16>
    %cst_51 = arith.constant dense<0.000000e+00> : vector<32x128xf32>
    %89 = tpu.matmul %86, %88, %cst_51 {dimension_numbers = #tpu.dot_dimension_numbers<[1], [0], [0], [1], [0, 0, 1, 1], [], []>} : vector<32x128xbf16>, vector<128x128xbf16>, vector<32x128xf32> -> vector<32x128xf32>
    %c2_i32_52 = arith.constant 2 : i32
    %90 = tpu.dynamic_rotate %80 by %c2_i32_52 dim 0 : vector<32x128xf32>, i32 -> vector<32x128xf32>
    %c2_i32_53 = arith.constant 2 : i32
    %91 = vector.broadcast %c2_i32_53 : i32 to vector<32x128xi32>
    %92 = arith.cmpi slt, %19, %91 : vector<32x128xi32>
    %cst_54 = arith.constant 0.000000e+00 : f32
    %93 = vector.broadcast %cst_54 : f32 to vector<32x128xf32>
    %94 = arith.select %92, %93, %90 : vector<32x128xi1>, vector<32x128xf32>
    %95 = arith.truncf %94 : vector<32x128xf32> to vector<32x128xbf16>
    %c1_55 = arith.constant 1 : index
    %c0_56 = arith.constant 0 : index
    %c0_57 = arith.constant 0 : index
    %96 = vector.load %arg8[%c1_55, %c0_56, %c0_57] : memref<3x128x128xbf16, #tpu.memory_space<vmem>>, vector<1x128x128xbf16>
    %97 = vector.shape_cast %96 : vector<1x128x128xbf16> to vector<128x128xbf16>
    %cst_58 = arith.constant dense<0.000000e+00> : vector<32x128xf32>
    %98 = tpu.matmul %95, %97, %cst_58 {dimension_numbers = #tpu.dot_dimension_numbers<[1], [0], [0], [1], [0, 0, 1, 1], [], []>} : vector<32x128xbf16>, vector<128x128xbf16>, vector<32x128xf32> -> vector<32x128xf32>
    %99 = arith.addf %89, %98 : vector<32x128xf32>
    %100 = arith.truncf %80 : vector<32x128xf32> to vector<32x128xbf16>
    %c2_59 = arith.constant 2 : index
    %c0_60 = arith.constant 0 : index
    %c0_61 = arith.constant 0 : index
    %101 = vector.load %arg8[%c2_59, %c0_60, %c0_61] : memref<3x128x128xbf16, #tpu.memory_space<vmem>>, vector<1x128x128xbf16>
    %102 = vector.shape_cast %101 : vector<1x128x128xbf16> to vector<128x128xbf16>
    %cst_62 = arith.constant dense<0.000000e+00> : vector<32x128xf32>
    %103 = tpu.matmul %100, %102, %cst_62 {dimension_numbers = #tpu.dot_dimension_numbers<[1], [0], [0], [1], [0, 0, 1, 1], [], []>} : vector<32x128xbf16>, vector<128x128xbf16>, vector<32x128xf32> -> vector<32x128xf32>
    %104 = arith.addf %99, %103 : vector<32x128xf32>
    %c0_63 = arith.constant 0 : index
    %c0_64 = arith.constant 0 : index
    %105 = vector.load %arg9[%c0_63, %c0_64] : memref<1x128xf32, #tpu.memory_space<vmem>>, vector<1x128xf32>
    %106 = vector.broadcast %105 : vector<1x128xf32> to vector<32x128xf32>
    %107 = arith.addf %104, %106 : vector<32x128xf32>
    %c4_i32_65 = arith.constant 4 : i32
    %108 = tpu.dynamic_rotate %107 by %c4_i32_65 dim 0 : vector<32x128xf32>, i32 -> vector<32x128xf32>
    %c4_i32_66 = arith.constant 4 : i32
    %109 = vector.broadcast %c4_i32_66 : i32 to vector<32x128xi32>
    %110 = arith.cmpi slt, %19, %109 : vector<32x128xi32>
    %cst_67 = arith.constant 0.000000e+00 : f32
    %111 = vector.broadcast %cst_67 : f32 to vector<32x128xf32>
    %112 = arith.select %110, %111, %108 : vector<32x128xi1>, vector<32x128xf32>
    %113 = arith.truncf %112 : vector<32x128xf32> to vector<32x128xbf16>
    %c0_68 = arith.constant 0 : index
    %c0_69 = arith.constant 0 : index
    %c0_70 = arith.constant 0 : index
    %114 = vector.load %arg10[%c0_68, %c0_69, %c0_70] : memref<3x128x128xbf16, #tpu.memory_space<vmem>>, vector<1x128x128xbf16>
    %115 = vector.shape_cast %114 : vector<1x128x128xbf16> to vector<128x128xbf16>
    %cst_71 = arith.constant dense<0.000000e+00> : vector<32x128xf32>
    %116 = tpu.matmul %113, %115, %cst_71 {dimension_numbers = #tpu.dot_dimension_numbers<[1], [0], [0], [1], [0, 0, 1, 1], [], []>} : vector<32x128xbf16>, vector<128x128xbf16>, vector<32x128xf32> -> vector<32x128xf32>
    %c2_i32_72 = arith.constant 2 : i32
    %117 = tpu.dynamic_rotate %107 by %c2_i32_72 dim 0 : vector<32x128xf32>, i32 -> vector<32x128xf32>
    %c2_i32_73 = arith.constant 2 : i32
    %118 = vector.broadcast %c2_i32_73 : i32 to vector<32x128xi32>
    %119 = arith.cmpi slt, %19, %118 : vector<32x128xi32>
    %cst_74 = arith.constant 0.000000e+00 : f32
    %120 = vector.broadcast %cst_74 : f32 to vector<32x128xf32>
    %121 = arith.select %119, %120, %117 : vector<32x128xi1>, vector<32x128xf32>
    %122 = arith.truncf %121 : vector<32x128xf32> to vector<32x128xbf16>
    %c1_75 = arith.constant 1 : index
    %c0_76 = arith.constant 0 : index
    %c0_77 = arith.constant 0 : index
    %123 = vector.load %arg10[%c1_75, %c0_76, %c0_77] : memref<3x128x128xbf16, #tpu.memory_space<vmem>>, vector<1x128x128xbf16>
    %124 = vector.shape_cast %123 : vector<1x128x128xbf16> to vector<128x128xbf16>
    %cst_78 = arith.constant dense<0.000000e+00> : vector<32x128xf32>
    %125 = tpu.matmul %122, %124, %cst_78 {dimension_numbers = #tpu.dot_dimension_numbers<[1], [0], [0], [1], [0, 0, 1, 1], [], []>} : vector<32x128xbf16>, vector<128x128xbf16>, vector<32x128xf32> -> vector<32x128xf32>
    %126 = arith.addf %116, %125 : vector<32x128xf32>
    %127 = arith.truncf %107 : vector<32x128xf32> to vector<32x128xbf16>
    %c2_79 = arith.constant 2 : index
    %c0_80 = arith.constant 0 : index
    %c0_81 = arith.constant 0 : index
    %128 = vector.load %arg10[%c2_79, %c0_80, %c0_81] : memref<3x128x128xbf16, #tpu.memory_space<vmem>>, vector<1x128x128xbf16>
    %129 = vector.shape_cast %128 : vector<1x128x128xbf16> to vector<128x128xbf16>
    %cst_82 = arith.constant dense<0.000000e+00> : vector<32x128xf32>
    %130 = tpu.matmul %127, %129, %cst_82 {dimension_numbers = #tpu.dot_dimension_numbers<[1], [0], [0], [1], [0, 0, 1, 1], [], []>} : vector<32x128xbf16>, vector<128x128xbf16>, vector<32x128xf32> -> vector<32x128xf32>
    %131 = arith.addf %126, %130 : vector<32x128xf32>
    %c0_83 = arith.constant 0 : index
    %c0_84 = arith.constant 0 : index
    %132 = vector.load %arg11[%c0_83, %c0_84] : memref<1x128xf32, #tpu.memory_space<vmem>>, vector<1x128xf32>
    %133 = vector.broadcast %132 : vector<1x128xf32> to vector<32x128xf32>
    %134 = arith.addf %131, %133 : vector<32x128xf32>
    %135 = arith.addf %134, %80 : vector<32x128xf32>
    %c0_85 = arith.constant 0 : index
    %c0_86 = arith.constant 0 : index
    %136 = vector.load %arg12[%c0_85, %c0_86] : memref<32x128xf32, #tpu.memory_space<vmem>>, vector<32x128xf32>
    tpu.vector_store %arg12[%c0_85, %c0_86], %135 {strides = array<i32>} : memref<32x128xf32, #tpu.memory_space<vmem>>, vector<32x128xf32>,
    return
  }
  func.func @transform_0(%arg0: i32) -> (i32, i32) {
    %c0_i32 = arith.constant 0 : i32
    %c0_i32_0 = arith.constant 0 : i32
    return %arg0, %c0_i32 : i32, i32
  }
  func.func @transform_1(%arg0: i32) -> (i32, i32, i32) {
    %c0_i32 = arith.constant 0 : i32
    %c0_i32_0 = arith.constant 0 : i32
    %c0_i32_1 = arith.constant 0 : i32
    %c0_i32_2 = arith.constant 0 : i32
    return %c0_i32, %c0_i32_0, %c0_i32_1 : i32, i32, i32
  }
  func.func @transform_2(%arg0: i32) -> (i32, i32) {
    %c0_i32 = arith.constant 0 : i32
    %c0_i32_0 = arith.constant 0 : i32
    %c0_i32_1 = arith.constant 0 : i32
    return %c0_i32, %c0_i32_0 : i32, i32
  }
  func.func @transform_3(%arg0: i32) -> (i32, i32, i32) {
    %c0_i32 = arith.constant 0 : i32
    %c0_i32_0 = arith.constant 0 : i32
    %c0_i32_1 = arith.constant 0 : i32
    %c0_i32_2 = arith.constant 0 : i32
    return %c0_i32, %c0_i32_0, %c0_i32_1 : i32, i32, i32
  }
  func.func @transform_4(%arg0: i32) -> (i32, i32) {
    %c0_i32 = arith.constant 0 : i32
    %c0_i32_0 = arith.constant 0 : i32
    %c0_i32_1 = arith.constant 0 : i32
    return %c0_i32, %c0_i32_0 : i32, i32
  }
  func.func @transform_5(%arg0: i32) -> (i32, i32) {
    %c0_i32 = arith.constant 0 : i32
    %c0_i32_0 = arith.constant 0 : i32
    %c0_i32_1 = arith.constant 0 : i32
    return %c0_i32, %c0_i32_0 : i32, i32
  }
  func.func @transform_6(%arg0: i32) -> (i32, i32) {
    %c0_i32 = arith.constant 0 : i32
    %c0_i32_0 = arith.constant 0 : i32
    %c0_i32_1 = arith.constant 0 : i32
    return %c0_i32, %c0_i32_0 : i32, i32
  }
  func.func @transform_7(%arg0: i32) -> (i32, i32, i32) {
    %c0_i32 = arith.constant 0 : i32
    %c0_i32_0 = arith.constant 0 : i32
    %c0_i32_1 = arith.constant 0 : i32
    %c0_i32_2 = arith.constant 0 : i32
    return %c0_i32, %c0_i32_0, %c0_i32_1 : i32, i32, i32
  }
  func.func @transform_8(%arg0: i32) -> (i32, i32) {
    %c0_i32 = arith.constant 0 : i32
    %c0_i32_0 = arith.constant 0 : i32
    %c0_i32_1 = arith.constant 0 : i32
    return %c0_i32, %c0_i32_0 : i32, i32
  }
  func.func @transform_9(%arg0: i32) -> (i32, i32, i32) {
    %c0_i32 = arith.constant 0 : i32
    %c0_i32_0 = arith.constant 0 : i32
    %c0_i32_1 = arith.constant 0 : i32
    %c0_i32_2 = arith.constant 0 : i32
    return %c0_i32, %c0_i32_0, %c0_i32_1 : i32, i32, i32
  }
  func.func @transform_10(%arg0: i32) -> (i32, i32) {
    %c0_i32 = arith.constant 0 : i32
    %c0_i32_0 = arith.constant 0 : i32
    %c0_i32_1 = arith.constant 0 : i32
    return %c0_i32, %c0_i32_0 : i32, i32
  }
  func.func @transform_11(%arg0: i32) -> (i32, i32) {
    %c0_i32 = arith.constant 0 : i32
    %c0_i32_0 = arith.constant 0 : i32
    return %arg0, %c0_i32 : i32, i32
  }
}

</mosaic_0001>

<bundles_post_ra>
// kernel: tpu_custom_call.1
= control target key start
LH: loop header
LB: loop body
LE: loop exit
PB: predicated region body
PF: predicated region fallthrough
CT: control target
= control target key end

     0   :  { %16 = vsyncpa [#allocation3], 0  ;;  %s3799_s0 = inlined_call_operand.vmem [shape: f32[64,4], index: 0, kind: input, shape index: {}]   ;;  %s3800_s1 = inlined_call_operand.hbm [shape: bf16[3,128,128], index: 1, kind: input, shape index: {}]   ;;  %s3801_s2 = inlined_call_operand.vmem [shape: f32[1,128], index: 2, kind: input, shape index: {}]   ;;  %s3802_s3 = inlined_call_operand.hbm [shape: bf16[3,128,128], index: 3, kind: input, shape index: {}]   ;;  %s3803_s4 = inlined_call_operand.vmem [shape: f32[1,128], index: 4, kind: input, shape index: {}]   ;;  %s3804_s5 = inlined_call_operand.vmem [shape: bf16[128,128], index: 5, kind: input, shape index: {}]   ;;  %s3805_s6 = inlined_call_operand.vmem [shape: f32[1,128], index: 6, kind: input, shape index: {}]   ;;  %s3806_s7 = inlined_call_operand.hbm [shape: bf16[3,128,128], index: 7, kind: input, shape index: {}]   ;;  %s3807_s8 = inlined_call_operand.vmem [shape: f32[1,128], index: 8, kind: input, shape index: {}]   ;;  %s3808_s9 = inlined_call_operand.hbm [shape: bf16[3,128,128], index: 9, kind: input, shape index: {}]   ;;  %s3809_s10 = inlined_call_operand.vmem [shape: f32[1,128], index: 10, kind: input, shape index: {}]   ;;  %s3810_s11 = inlined_call_operand.hbm [shape: f32[64,128], index: 11, kind: output, shape index: {}]  }
   0x1   :  { %17 = vsyncpa [#allocation6], 0 }
   0x2   :  { %18 = vsyncpa [#allocation9], 0 }
   0x3   :  { %19 = vsyncpa [#allocation4], 0 }
   0x4   :  { %21 = vsyncpa [#allocation4 + $0x1], 0  ;;  %s3357_s17 = smov 0   ;;  %s3359_s18 = smov 0  }
   0x5   :  { %s3361_s19 = smov 0   ;;  %s3363_s20 = smov 0  }
   0x6 LB: > { %3812 = sst [smem:[#allocation15_spill]] %s3281_s19  ;;  %s3378_s21 = sadd.s32 4294967295, %s3285_s20   ;;  %s3285_s20 = sphi %s3363_s20, %s3837_s20   ;;  %s3281_s19 = sphi %s3361_s19, %s3836_s19   ;;  %s3277_s18 = sphi %s3359_s18, %s3835_s18   ;;  %s3273_s17 = sphi %s3357_s17, %s3834_s17  }
   0x7   : > { %s2318_s22 = sadd.s32 4294967294, %s3285_s20   ;;  %s3382_s23 = sadd.s32 1, %s3285_s20  }
   0x8   : > { %s270_s24 = sadd.s32 1, %s3281_s19  ;;  %s267_s25 = ssub.s32 %s3285_s20, %s3382_s23 }
   0x9   : > { %p280_p0 = scmp.ne.s32.totalorder %s3281_s19, %s3277_s18  ;;  %p268_p1 = scmp.eq.s32.totalorder %s267_s25, 0 }
   0xa   : > { %p281_p2 = scmp.eq.s32.totalorder %s3378_s21, 1  ;;  %p286_p3 = scmp.ne.s32.totalorder %s3277_s18, %s3273_s17 }
   0xb   : > { %p287_p4 = scmp.eq.s32.totalorder %s2318_s22, 1  ;;  %p2319_p7 = scmp.ge.s32.totalorder %s3285_s20, 1 }
   0xc   : > { %s3393_s26 = scalar_select %p268_p1, %s3281_s19, %s270_s24  }
   0xd   : > { %p3395_p5 = por %p281_p2, %p280_p0  ;;  %p3399_p6 = por %p287_p4, %p286_p3 }
   0xe   : > { %3813 = sst [smem:[#allocation16_spill]] %s3393_s26  ;;  %p294_p8 = scmp.lt.s32.totalorder %s3285_s20, 3 }
   0xf   : > { %p2955_p9 = scmp.eq.s32.totalorder %s3378_s21, 0  ;;  %s3287_s30 = smov [#allocation5]  }
  0x10   : > { %p3406_p10 = pnand %p2319_p7, %p294_p8  ;;  %s322_s12 = sshll.u32 %s3287_s30, 4  ;;  %s323_s12 = int_to_ptr.vmem [resolvable:$true] %s322_s12 }
  0x11   : > { %s3288_s14 = smov [#allocation2]   ;;  %s3289_s16 = smov [#allocation7]  }
  0x12   : > { %p2938_p11 = pneg %p3406_p10  ;;  %s306_s15 = sshll.u32 %s3288_s14, 4  ;;  %s307_s15 = int_to_ptr.vmem [resolvable:$true] %s306_s15 }
  0x13   : > { %s344_s22 = sshll.u32 %s3289_s16, 4  ;;  %s3120_s24 = scalar_lea.vmem %s323_s12, 3072  ;;  %s345_s22 = int_to_ptr.vmem [resolvable:$true] %s344_s22 }
  0x14   : > { %p3414_p12 = pnand %p2955_p9, %p2938_p11  ;;  %p3121_p0 = scmp.ne.s32.totalorder %s323_s12, %s3120_s24 }
  0x15   : > { %p3128_p3 = scmp.lt.s32.totalorder %s323_s12, %s323_s12  ;;  %p3129_p4 = scmp.lt.s32.totalorder %s3120_s24, %s3120_s24 }
  0x16   : > { %p3111_p13 = pneg %p3414_p12 }
  0x17   : > { %p3130_p7 = por %p3129_p4, %p3128_p3 }
  0x18   : > { %p3123_p1 = pnand %p3121_p0, %p3111_p13 }
  0x1a   : > { %p3124_p2 = pneg %p3123_p1 }
  0x1c   : > { %p3131_p8 = pnand %p3130_p7, %p3124_p2 }
  0x1e   : > { %3134 = shalt.err (!%p3131_p8)
}
  0x1f   : > { %s3290_s25 = smov 64   ;;  %s3291_s30 = smov 4  }
  0x20   : > { %2944 = dma.hbm_to_vmem [thread:$0]  (!%p3414_p12), %s3802_s3, 3072, %s323_s12, [#allocation6], %s3290_s25, %s3290_s25, %s3291_s30  }
  0x21   : > { %s3146_s26 = scalar_lea.vmem %s307_s15, 3072  ;;  %p3154_p2 = scmp.lt.s32.totalorder %s307_s15, %s307_s15 }
  0x22   : > { %p3147_p11 = scmp.ne.s32.totalorder %s307_s15, %s3146_s26  ;;  %p3155_p3 = scmp.lt.s32.totalorder %s3146_s26, %s3146_s26 }
  0x24   : > { %p3149_p0 = pnand %p3147_p11, %p3111_p13  ;;  %p3156_p4 = por %p3155_p3, %p3154_p2 }
  0x26   : > { %p3150_p1 = pneg %p3149_p0 }
  0x28   : > { %p3157_p7 = pnand %p3156_p4, %p3150_p1 }
  0x2a   : > { %3160 = shalt.err (!%p3157_p7)
}
  0x2b   : > { %2941 = dma.hbm_to_vmem [thread:$0]  (!%p3414_p12), %s3800_s1, 3072, %s307_s15, [#allocation3], %s3290_s25, %s3290_s25, %s3291_s30  }
  0x2c   : > { %s3172_s12 = scalar_lea.vmem %s345_s22, 3072  ;;  %p3180_p2 = scmp.lt.s32.totalorder %s345_s22, %s345_s22 }
  0x2d   : > { %p3173_p8 = scmp.ne.s32.totalorder %s345_s22, %s3172_s12  ;;  %p3181_p1 = scmp.lt.s32.totalorder %s3172_s12, %s3172_s12 }
  0x2f   : > { %p3175_p11 = pnand %p3173_p8, %p3111_p13  ;;  %p3182_p3 = por %p3181_p1, %p3180_p2 }
  0x31   : > { %p3176_p0 = pneg %p3175_p11 }
  0x33   : > { %p3183_p4 = pnand %p3182_p3, %p3176_p0 }
  0x35   : > { %3186 = shalt.err (!%p3183_p4)
}
  0x36   : > { %2947 = dma.hbm_to_vmem [thread:$0]  (!%p3414_p12), %s3806_s7, 3072, %s345_s22, [#allocation6], %s3290_s25, %s3290_s25, %s3291_s30  }
  0x37   : > { %s3292_s15 = smov [#allocation8]  }
  0x38   : > { %s360_s14 = sshll.u32 %s3292_s15, 4  ;;  %s361_s14 = int_to_ptr.vmem [resolvable:$true] %s360_s14 }
  0x39   : > { %s3198_s16 = scalar_lea.vmem %s361_s14, 3072  ;;  %p3206_p0 = scmp.lt.s32.totalorder %s361_s14, %s361_s14 }
  0x3a   : > { %p3199_p7 = scmp.ne.s32.totalorder %s361_s14, %s3198_s16  ;;  %p3207_p2 = scmp.lt.s32.totalorder %s3198_s16, %s3198_s16 }
  0x3c   : > { %p3201_p8 = pnand %p3199_p7, %p3111_p13  ;;  %p3208_p1 = por %p3207_p2, %p3206_p0 }
  0x3e   : > { %p3202_p11 = pneg %p3201_p8 }
  0x40   : > { %p3209_p3 = pnand %p3208_p1, %p3202_p11 }
  0x42   : > { %3212 = shalt.err (!%p3209_p3)
}
  0x43   : > { %2950 = dma.hbm_to_vmem [thread:$0]  (!%p3414_p12), %s3808_s9, 3072, %s361_s14, [#allocation9], %s3290_s25, %s3290_s25, %s3291_s30  }
  0x44   : > { %388 = sbr.rel (%p3406_p10) target bundleno = 1087 (0x43f), region = 64 }
  0x49   : > { %3256 = dma.done.wait (%p2955_p9), [#allocation3], 3072  }
  0x4a   : > { %3258 = vsyncadd (%p2955_p9), [#allocation3], 4294964224 }
  0x4b   : > { %3260 = dma.done.wait (%p2955_p9), [#allocation6], 6144  }
  0x4c   : > { %3262 = vsyncadd (%p2955_p9), [#allocation6], 4294961152 }
  0x4d   : > { %3264 = dma.done.wait (%p2955_p9), [#allocation9], 3072  }
  0x4e   : > { %3266 = vsyncadd (%p2955_p9), [#allocation9], 4294964224  ;;  %s2331_s29 = sshll.u32 %s3378_s21, 2  ;;  %v3005_v0 = vld [vmem:[#allocation2 + $0x78] sm:$0xff]   ;;  %v3007_v2 = vld [vmem:[#allocation2 + $0x70] sm:$0xff]   ;;  %v457_v5 = vlaneseq  ;;  %vm452_vm0 = vcmask 31744  }
  0x4f   : > { %v3006_v1 = vld [vmem:[#allocation2 + $0x38] sm:$0xff]   ;;  %2660 = vmatprep.subr.bf16.mxu0 %v3005_v0  ;;  %p441_p10 = scmp.lt.s32.totalorder %s2331_s29, 7  ;;  %v3008_v3 = vld [vmem:[#allocation2 + $0x30] sm:$0xff]   ;;  %v3009_v4 = vld [vmem:[#allocation2 + $0x68] sm:$0xff]   ;;  %vm3293_vm5 = vmmov 1   ;;  %s437_s19 = sand.u32 1, %s3277_s18  }
  0x50   : > { %2680 = vmatprep.subr.bf16.mxu1 %v3006_v1  ;;  %2661 = vmatpush3.bf16.msra.mxu0 %v3005_v0  ;;  %v3010_v6 = vld [vmem:[#allocation2 + $0x28] sm:$0xff]   ;;  %v3011_v7 = vld [vmem:[#allocation2 + $0x60] sm:$0xff]   ;;  %v3479_v8 = vshrl.u32 %v457_v5, 7  ;;  %v3013_v10 = vld [vmem:[#allocation2 + $0x58] sm:$0xff]   ;;  %s2330_s14 = sshll.u32 %s437_s19, 5  ;;  %s2523_s24 = sshll.u32 %s3378_s21, 9 }
  0x51   : > { %2681 = vmatpush3.bf16.msra.mxu1 %v3006_v1  ;;  %2662 = vmatprep.subr.bf16.mxu0 %v3007_v2  ;;  %s3839_s29 = smov (!%p441_p10, %s2331_s29), 7  ;;  %v3012_v9 = vld [vmem:[#allocation2 + $0x20] sm:$0xff]   ;;  %v3014_v12 = vld [vmem:[#allocation2 + $0x18] sm:$0xff]   ;;  %v3015_v14 = vld [vmem:[#allocation2 + $0x50] sm:$0xff]   ;;  %s439_s16 = scalar_lea.vmem [#allocation10], %s2330_s14 }
  0x52   : > { %2682 = vmatprep.subr.bf16.mxu1 %v3008_v3  ;;  %s2332_s13 = sshll.u32 %s3839_s29, 3  ;;  %v3482_v11 = vand.u32 15, %v3479_v8  ;;  %v460_v13 = vadd.s32 16, %v3479_v8  ;;  %v3016_v15 = vld [vmem:[#allocation2 + $0x10] sm:$0xff]   ;;  %vm514_vm1 = vcmp.lt.s32.totalorder %v3479_v8, 2  ;;  %vm549_vm2 = vcmp.lt.s32.totalorder %v3479_v8, 1  ;;  %vm3541_vm11 = vmpackc.low %vm452_vm0, %vm452_vm0  ;;  %s3754_s25 = scalar_lea.hbm %s3810_s11, %s2523_s24 }
  0x53   : > { %s444_s12 = scalar_lea.vmem %s3799_s0, %s2332_s13  ;;  %v3017_v30 = vld [vmem:[#allocation2 + $0x48] sm:$0xff]   ;;  %v3019_v37 = vld [vmem:[#allocation2 + $0x40] sm:$0xff]   ;;  %v3021_v48 = vld [vmem:[#allocation2 + $0xb8] sm:$0xff]   ;;  %vm1420_vm13 = vcmp.lt.s32.totalorder %v3479_v8, 4  ;;  %s2215_s22 = sshll.u32 %s439_s16, 4  ;;  %s3749_s22 = int_to_ptr.vmem [resolvable:$true] %s2215_s22 }
  0x54   : > { %2663 = vmatpush3.bf16.msra.mxu0 %v3007_v2  ;;  %v3488_v16 = vld [vmem:[%s444_s12] sm:$0xff]  ;;  %v3490_v17 = vld [vmem:[%s444_s12 + $0x8] sm:$0xff]  ;;  %vm2524_vm3 = vcmp.ge.s32.totalorder %v3482_v11, 1  ;;  %v3495_v18 = vld [vmem:[%s444_s12 + $0x10] sm:$0xff]  ;;  %v3505_v25 = vand.u32 15, %v460_v13  ;;  %vm2526_vm4 = vcmp.ge.s32.totalorder %v3482_v11, 2 }
  0x55   : > { %2683 = vmatpush3.bf16.msra.mxu1 %v3008_v3  ;;  %2664 = vmatprep.subr.bf16.mxu0 %v3009_v4  ;;  %v3497_v19 = vld [vmem:[%s444_s12 + $0x18] sm:$0xff]  ;;  %v453_v20 = vsel %vm452_vm0, %v3488_v16, 0.0  ;;  %v454_v21 = vsel %vm452_vm0, %v3490_v17, 0.0  ;;  %v455_v31 = vsel %vm452_vm0, %v3495_v18, 0.0  ;;  %v3018_v33 = vld [vmem:[#allocation2 + $0x8] sm:$0xff]   ;;  %vm3521_vm6 = vmpackc.low %vm3293_vm5, %vm2524_vm3  ;;  %v3562_v56 = vpack.c.bf16 %v3490_v17, %v3488_v16  ;;  %s3759_s21 = scalar_lea.sflag [#allocation4], %s437_s19 }
  0x56   : > { %2684 = vmatprep.subr.bf16.mxu1 %v3010_v6  ;;  %v456_v22 = vsel %vm452_vm0, %v3497_v19, 0.0  ;;  %v545_v23 = vrot.slane %v453_v20, 7  ;;  %v546_v24 = vrot.slane %v454_v21, 7  ;;  %v510_v27 = vrot.slane %v453_v20, 6  ;;  %vm3527_vm8 = vmpackc.low %vm3293_vm5, %vm2526_vm4  ;;  %v3020_v43 = vld [vmem:[#allocation2] sm:$0xff]   ;;  %v3022_v54 = vld [vmem:[#allocation2 + $0xb0] sm:$0xff]  }
  0x57   : > { %v548_v26 = vrot.slane %v456_v22, 7  ;;  %v511_v28 = vrot.slane %v454_v21, 6  ;;  %v513_v29 = vrot.slane %v456_v22, 6  ;;  %vm2525_vm7 = vcmp.ge.s32.totalorder %v3505_v25, 1  ;;  %v3023_v57 = vld [vmem:[#allocation2 + $0xa8] sm:$0xff]   ;;  %v3024_v58 = vld [vmem:[#allocation2 + $0xa0] sm:$0xff]  }
  0x58   : > { %2665 = vmatpush3.bf16.msra.mxu0 %v3009_v4  ;;  %v552_v32 = vsel %vm549_vm2, %v545_v23, %v546_v24  ;;  %v547_v42 = vrot.slane %v455_v31, 7  ;;  %vm2527_vm9 = vcmp.ge.s32.totalorder %v3505_v25, 2  ;;  %v512_v44 = vrot.slane %v455_v31, 6  ;;  %vm3535_vm10 = vmpackc.low %vm3293_vm5, %vm2525_vm7  ;;  %v3025_v59 = vld [vmem:[#allocation2 + $0x98] sm:$0xff]   ;;  %v3026_v60 = vld [vmem:[#allocation2 + $0x90] sm:$0xff]   ;;  %s3213_s30 = scalar_lea.vmem %s3749_s22, 512 }
  0x59   : > { %2685 = vmatpush3.bf16.msra.mxu1 %v3010_v6  ;;  %2666 = vmatprep.subr.bf16.mxu0 %v3011_v7  ;;  %v553_v34 = vsel %vm549_vm2, %v548_v26, %v545_v23  ;;  %v517_v35 = vsel %vm514_vm1, %v510_v27, %v511_v28  ;;  %v518_v36 = vsel %vm514_vm1, %v513_v29, %v510_v27  ;;  %vm3548_vm12 = vmpackc.low %vm3293_vm5, %vm2527_vm9  ;;  %v3027_v61 = vld [vmem:[#allocation2 + $0x88] sm:$0xff]   ;;  %v3028_v62 = vld [vmem:[#allocation2 + $0x80] sm:$0xff]   ;;  %vm2528_vm14 = vcmp.ge.s32.totalorder %v3482_v11, 4  ;;  %p3214_p9 = scmp.ne.s32.totalorder %s3749_s22, %s3213_s30  ;;  %s3294_s12 = smov [#allocation10]  }
  0x5a   : > { %2686 = vmatprep.subr.bf16.mxu1 %v3012_v9  ;;  %v2343_v39 = vpack.c.bf16 %v552_v32, %v553_v34  ;;  %v2359_v40 = vpack.c.bf16 %v517_v35, %v518_v36  ;;  %v550_v49 = vsel %vm549_vm2, %v547_v42, %v548_v26  ;;  %v551_v50 = vsel %vm549_vm2, %v546_v24, %v547_v42  ;;  %v3029_v0 = vld [vmem:[#allocation5 + $0x78] sm:$0xff]   ;;  %v3031_v2 = vld [vmem:[#allocation5 + $0x70] sm:$0xff]   ;;  %v3033_v4 = vld [vmem:[#allocation5 + $0x68] sm:$0xff]   ;;  %s3217_s26 = sshll.u32 %s3294_s12, 4  ;;  %s3218_s26 = int_to_ptr.vmem [resolvable:$false] %s3217_s26 }
  0x5b   : > { %v515_v51 = vsel %vm514_vm1, %v512_v44, %v513_v29  ;;  %v516_v52 = vsel %vm514_vm1, %v511_v28, %v512_v44  ;;  %v2347_v53 = vpack.c.bf16 %v550_v49, %v551_v50  ;;  %v3573_v63 = vpack.c.bf16 %v3497_v19, %v3495_v18  ;;  %v3030_v1 = vld [vmem:[#allocation5 + $0x38] sm:$0xff]   ;;  %v3032_v3 = vld [vmem:[#allocation5 + $0x30] sm:$0xff]   ;;  %v3034_v5 = vld [vmem:[#allocation5 + $0x28] sm:$0xff]   ;;  %p3215_p12 = pnand %p3214_p9, %p3395_p5  ;;  %s3219_s15 = scalar_lea.vmem %s3218_s26, 1024 }
  0x5c   : > { %2667 = vmatpush3.bf16.msra.mxu0 %v3011_v7  ;;  %2676 = vmatprep.mubr.msk.bf16.mxu0 %vm3521_vm6, %v2343_v39  ;;  %v2363_v55 = vpack.c.bf16 %v515_v51, %v516_v52  ;;  %v3035_v6 = vld [vmem:[#allocation5 + $0x60] sm:$0xff]   ;;  %v3040_v13 = vld [vmem:[#allocation5 + $0x10] sm:$0xff]   ;;  %v3045_v18 = vld [vmem:[#allocation5 + $0xb8] sm:$0xff]   ;;  %vm2529_vm15 = vcmp.ge.s32.totalorder %v3505_v25, 4  ;;  %p3220_p4 = scmp.lt.s32.totalorder %s3749_s22, %s3218_s26  ;;  %p3221_p7 = scmp.lt.s32.totalorder %s3219_s15, %s3213_s30 }
  0x5d   : > { %2687 = vmatpush3.bf16.msra.mxu1 %v3012_v9  ;;  %2668 = vmatprep.subr.bf16.mxu0 %v3013_v10  ;;  %v3036_v7 = vld [vmem:[#allocation5 + $0x20] sm:$0xff]   ;;  %v3037_v9 = vld [vmem:[#allocation5 + $0x58] sm:$0xff]   ;;  %v3049_v38 = vld [vmem:[#allocation5 + $0xa8] sm:$0xff]   ;;  %p3216_p13 = pneg %p3215_p12 }
  0x5e   : > { %2688 = vmatprep.subr.bf16.mxu1 %v3014_v12  ;;  %2696 = vmatprep.mubr.msk.bf16.mxu1 %vm3527_vm8, %v2359_v40  ;;  %v3043_v16 = vld [vmem:[#allocation5 + $0x40] sm:$0xff]   ;;  %v3046_v19 = vld [vmem:[%s3804_s5 + $0x38] sm:$0xff]   ;;  %vm3686_vm0 = vmpackc.low %vm3293_vm5, %vm2528_vm14  ;;  %p3222_p8 = por %p3221_p7, %p3220_p4 }
  0x5f   : > { %v3044_v17 = vld [vmem:[#allocation5] sm:$0xff]   ;;  %v3069_v46 = vld [vmem:[#allocation7 + $0x58] sm:$0xff]   ;;  %v3103_v8 = vld [vmem:[#allocation8 + $0xa8] sm:$0xff]  }
  0x60   : > { %2669 = vmatpush3.bf16.msra.mxu0 %v3013_v10  ;;  %v3038_v10 = vld [vmem:[#allocation5 + $0x18] sm:$0xff]   ;;  %v2379_v35 = vld [vmem:[%s3801_s2] ss:$0 sm:$0xff]  ;;  %v3106_v25 = vld [vmem:[#allocation8 + $0x90] sm:$0xff]   ;;  %p3223_p11 = pnand %p3222_p8, %p3216_p13 }
  0x61   : > { %2689 = vmatpush3.bf16.msra.mxu1 %v3014_v12  ;;  %2670 = vmatprep.subr.bf16.mxu0 %v3015_v14  ;;  %v3039_v12 = vld [vmem:[#allocation5 + $0x50] sm:$0xff]   ;;  %v3051_v45 = vld [vmem:[#allocation5 + $0xa0] sm:$0xff]   ;;  %v3105_v41 = vld [vmem:[#allocation8 + $0x98] sm:$0xff]  }
  0x62   : > { %2690 = vmatprep.subr.bf16.mxu1 %v3016_v15  ;;  %v3107_v47 = vld [vmem:[#allocation8 + $0x88] sm:$0xff]  }
  0x64   : > { %2671 = vmatpush3.bf16.msra.mxu0 %v3015_v14  ;;  %v3041_v14 = vld [vmem:[#allocation5 + $0x48] sm:$0xff]  }
  0x65   : > { %2691 = vmatpush3.bf16.msra.mxu1 %v3016_v15  ;;  %2672 = vmatprep.subr.bf16.mxu0 %v3017_v30  ;;  %v3042_v15 = vld [vmem:[#allocation5 + $0x8] sm:$0xff]  }
  0x66   : > { %2692 = vmatprep.subr.bf16.mxu1 %v3018_v33 }
  0x68   : > { %2673 = vmatpush3.bf16.msra.mxu0 %v3017_v30 }
  0x69   : > { %2693 = vmatpush3.bf16.msra.mxu1 %v3018_v33  ;;  %2674 = vmatprep.subr.bf16.mxu0 %v3019_v37 }
  0x6a   : > { %2694 = vmatprep.subr.bf16.mxu1 %v3020_v43 }
  0x6c   : > { %2675 = vmatpush3.bf16.msra.mxu0 %v3019_v37 }
  0x6d   : > { %2695 = vmatpush3.bf16.msra.mxu1 %v3020_v43  ;;  %2700 = vmatprep.subr.bf16.mxu0 %v3021_v48 }
  0x6e   : > { %2720 = vmatprep.subr.bf16.mxu1 %v3029_v0 }
  0x6f   : > { %2677 = vmatmul.mubr.msk.bf16.vlgmr.msra.gmra.mxu0 %vm3535_vm10, %v2347_v53 }
  0x70   : > { %2697 = vmatmul.mubr.msk.bf16.vlgmr.msra.gmra.mxu1 %vm3548_vm12, %v2363_v55  ;;  %2701 = vmatpush3.bf16.msra.mxu0 %v3021_v48 }
  0x71   : > { %2702 = vmatprep.subr.bf16.mxu0 %v3022_v54  ;;  %2716 = vmatprep.mubr.msk.bf16.mxu0 %vm3541_vm11, %v3562_v56 }
  0x72   : > { %2721 = vmatpush3.bf16.msra.mxu1 %v3029_v0 }
  0x73   : > { %2722 = vmatprep.subr.bf16.mxu1 %v3031_v2 }
  0x74   : > { %2703 = vmatpush3.bf16.msra.mxu0 %v3022_v54 }
  0x75   : > { %2704 = vmatprep.subr.bf16.mxu0 %v3023_v57 }
  0x76   : > { %2723 = vmatpush3.bf16.msra.mxu1 %v3031_v2 }
  0x77   : > { %2724 = vmatprep.subr.bf16.mxu1 %v3033_v4 }
  0x78   : > { %2705 = vmatpush3.bf16.msra.mxu0 %v3023_v57 }
  0x79   : > { %2706 = vmatprep.subr.bf16.mxu0 %v3024_v58 }
  0x7a   : > { %2725 = vmatpush3.bf16.msra.mxu1 %v3033_v4 }
  0x7b   : > { %2726 = vmatprep.subr.bf16.mxu1 %v3035_v6 }
  0x7c   : > { %2707 = vmatpush3.bf16.msra.mxu0 %v3024_v58 }
  0x7d   : > { %2708 = vmatprep.subr.bf16.mxu0 %v3025_v59 }
  0x7e   : > { %2727 = vmatpush3.bf16.msra.mxu1 %v3035_v6 }
  0x7f   : > { %2728 = vmatprep.subr.bf16.mxu1 %v3037_v9 }
  0x80   : > { %2709 = vmatpush3.bf16.msra.mxu0 %v3025_v59 }
  0x81   : > { %2710 = vmatprep.subr.bf16.mxu0 %v3026_v60 }
  0x82   : > { %2729 = vmatpush3.bf16.msra.mxu1 %v3037_v9 }
  0x83   : > { %2730 = vmatprep.subr.bf16.mxu1 %v3039_v12 }
  0x84   : > { %2711 = vmatpush3.bf16.msra.mxu0 %v3026_v60 }
  0x85   : > { %2712 = vmatprep.subr.bf16.mxu0 %v3027_v61 }
  0x86   : > { %2731 = vmatpush3.bf16.msra.mxu1 %v3039_v12  ;;  %v3048_v12 = vld [vmem:[%s3804_s5 + $0x30] sm:$0xff]  }
  0x87   : > { %2732 = vmatprep.subr.bf16.mxu1 %v3041_v14 }
  0x88   : > { %2713 = vmatpush3.bf16.msra.mxu0 %v3027_v61 }
  0x89   : > { %2714 = vmatprep.subr.bf16.mxu0 %v3028_v62 }
  0x8a   : > { %2733 = vmatpush3.bf16.msra.mxu1 %v3041_v14  ;;  %v3050_v14 = vld [vmem:[%s3804_s5 + $0x28] sm:$0xff]  }
  0x8b   : > { %2734 = vmatprep.subr.bf16.mxu1 %v3043_v16 }
  0x8c   : > { %2715 = vmatpush3.bf16.msra.mxu0 %v3028_v62 }
  0x8d   : > { %2740 = vmatprep.subr.bf16.mxu0 %v3030_v1 }
  0x8e   : > { %2735 = vmatpush3.bf16.msra.mxu1 %v3043_v16  ;;  %v3053_v16 = vld [vmem:[#allocation5 + $0x98] sm:$0xff]  }
  0x8f   : > { %2717 = vmatmul.mubr.msk.bf16.vlgmr.msra.gmra.mxu0 %vm3541_vm11, %v3573_v63  ;;  %2760 = vmatprep.subr.bf16.mxu1 %v3045_v18 }
  0x90   : > { %2741 = vmatpush3.bf16.msra.mxu0 %v3030_v1 }
  0x91   : > { %2742 = vmatprep.subr.bf16.mxu0 %v3032_v3 }
  0x94   : > { %2743 = vmatpush3.bf16.msra.mxu0 %v3032_v3 }
  0x95   : > { %2744 = vmatprep.subr.bf16.mxu0 %v3034_v5 }
  0x98   : > { %2745 = vmatpush3.bf16.msra.mxu0 %v3034_v5 }
  0x99   : > { %2746 = vmatprep.subr.bf16.mxu0 %v3036_v7 }
  0x9c   : > { %2747 = vmatpush3.bf16.msra.mxu0 %v3036_v7 }
  0x9d   : > { %2748 = vmatprep.subr.bf16.mxu0 %v3038_v10 }
  0xa0   : > { %2749 = vmatpush3.bf16.msra.mxu0 %v3038_v10  ;;  %v3047_v10 = vld [vmem:[#allocation5 + $0xb0] sm:$0xff]  }
  0xa1   : > { %2750 = vmatprep.subr.bf16.mxu0 %v3040_v13 }
  0xa4   : > { %2751 = vmatpush3.bf16.msra.mxu0 %v3040_v13 }
  0xa5   : > { %2752 = vmatprep.subr.bf16.mxu0 %v3042_v15 }
  0xa8   : > { %2753 = vmatpush3.bf16.msra.mxu0 %v3042_v15  ;;  %v3052_v15 = vld [vmem:[%s3804_s5 + $0x20] sm:$0xff]  }
  0xa9   : > { %2754 = vmatprep.subr.bf16.mxu0 %v3044_v17 }
  0xac   : > { %2755 = vmatpush3.bf16.msra.mxu0 %v3044_v17  ;;  %v3054_v17 = vld [vmem:[%s3804_s5 + $0x18] sm:$0xff]  }
  0xad   : > { %2780 = vmatprep.subr.bf16.mxu0 %v3046_v19 }
 0x12f   : > { %v2678_v20 = vpop.f32.mrf.mxu0 }
 0x130   : > { %v2698_v21 = vpop.f32.mrf.mxu1 }
 0x131   : > { %v663_v22 = vpop.f32.mrf.mxu0  ;;  %v769_v28 = vadd.f32 %v2698_v21, %v2678_v20  ;;  %v3058_v20 = vld [vmem:[%s3804_s5 + $0x8] sm:$0xff]   ;;  %v3059_v21 = vld [vmem:[#allocation5 + $0x80] sm:$0xff]  }
 0x132   : > { %v760_v23 = vpop.f32.mrf.mxu1 }
 0x133   : > { %v2679_v24 = vpop.f32.mrf.mxu0  ;;  %v761_v30 = vadd.f32 %v760_v23, %v663_v22  ;;  %v3060_v22 = vld [vmem:[%s3804_s5] sm:$0xff]  }
 0x134   : > { %v2699_v26 = vpop.f32.mrf.mxu1 }
 0x135   : > { %v666_v27 = vpop.f32.mrf.mxu0  ;;  %v772_v34 = vadd.f32 %v2699_v26, %v2679_v24  ;;  %v3061_v24 = vld [vmem:[#allocation7 + $0x78] sm:$0xff]  }
 0x136   : > { %v763_v31 = vpop.f32.mrf.mxu1  ;;  %v3062_v26 = vld [vmem:[#allocation7 + $0x38] sm:$0xff]  }
 0x137   : > { %v764_v39 = vadd.f32 %v763_v31, %v666_v27  ;;  %v3063_v27 = vld [vmem:[#allocation7 + $0x70] sm:$0xff]   ;;  %v3067_v31 = vld [vmem:[#allocation7 + $0x60] sm:$0xff]  }
 0x14f   : > { %v2718_v29 = vpop.f32.mrf.mxu0 }
 0x150   : > { %v893_v32 = vadd.f32 %v2718_v29, %v769_v28  ;;  %v3064_v28 = vld [vmem:[#allocation7 + $0x30] sm:$0xff]   ;;  %v3065_v29 = vld [vmem:[#allocation7 + $0x68] sm:$0xff]  }
 0x151   : > { %v876_v33 = vpop.f32.mrf.mxu0 }
 0x152   : > { %v891_v36 = vadd.f32 %v876_v33, %v761_v30  ;;  %v3584_v42 = vadd.f32 %v2379_v35, %v893_v32  ;;  %v3066_v30 = vld [vmem:[#allocation7 + $0x28] sm:$0xff]   ;;  %v3068_v32 = vld [vmem:[#allocation7 + $0x20] sm:$0xff]   ;;  %v3071_v33 = vld [vmem:[#allocation7 + $0x50] sm:$0xff]  }
 0x153   : > { %v2719_v37 = vpop.f32.mrf.mxu0 }
 0x154   : > { %v894_v40 = vadd.f32 %v2719_v37, %v772_v34  ;;  %v902_v43 = vadd.f32 %v2379_v35, %v891_v36  ;;  %v908_v53 = vrot.slane %v3584_v42, 6  ;;  %v938_v54 = vrot.slane %v3584_v42, 7  ;;  %v3072_v34 = vld [vmem:[#allocation7 + $0x10] sm:$0xff]   ;;  %v3074_v36 = vld [vmem:[#allocation7 + $0x8] sm:$0xff]   ;;  %v3075_v37 = vld [vmem:[#allocation7 + $0x40] sm:$0xff]  }
 0x155   : > { %v879_v44 = vpop.f32.mrf.mxu0 }
 0x156   : > { %v3586_v48 = vadd.f32 %v2379_v35, %v894_v40  ;;  %v892_v49 = vadd.f32 %v879_v44, %v764_v39  ;;  %v906_v55 = vrot.slane %v902_v43, 6  ;;  %v936_v57 = vrot.slane %v902_v43, 7  ;;  %v3076_v39 = vld [vmem:[#allocation7] sm:$0xff]   ;;  %v3645_v40 = vld [vmem:[#allocation7 + $0xb8] sm:$0xff]  }
 0x158   : > { %v909_v50 = vrot.slane %v3586_v48, 6  ;;  %v939_v51 = vrot.slane %v3586_v48, 7  ;;  %v903_v52 = vadd.f32 %v2379_v35, %v892_v49  ;;  %v1162_v23 = vpack.c.bf16 %v3586_v48, %v3584_v42  ;;  %v3073_v35 = vld [vmem:[#allocation7 + $0x48] sm:$0xff]  }
 0x15a   : > { %v907_v58 = vrot.slane %v903_v52, 6  ;;  %v937_v59 = vrot.slane %v903_v52, 7  ;;  %v910_v60 = vsel %vm514_vm1, %v908_v53, %v909_v50  ;;  %v940_v61 = vsel %vm549_vm2, %v938_v54, %v939_v51 }
 0x15b   : > { %v943_v62 = vsel %vm549_vm2, %v939_v51, %v936_v57  ;;  %v913_v0 = vsel %vm514_vm1, %v909_v50, %v906_v55  ;;  %v1161_v13 = vpack.c.bf16 %v903_v52, %v902_v43 }
 0x15c   : > { %v911_v1 = vsel %vm514_vm1, %v907_v58, %v908_v53  ;;  %v941_v2 = vsel %vm549_vm2, %v937_v59, %v938_v54  ;;  %v942_v3 = vsel %vm549_vm2, %v936_v57, %v937_v59  ;;  %v912_v4 = vsel %vm514_vm1, %v906_v55, %v907_v58  ;;  %v2420_v59 = vld [vmem:[%s3803_s4] ss:$0 sm:$0xff]  ;;  %vm3695_vm2 = vmpackc.low %vm3293_vm5, %vm2529_vm15 }
 0x15d   : > { %v2390_v5 = vpack.c.bf16 %v942_v3, %v943_v62  ;;  %v2406_v6 = vpack.c.bf16 %v912_v4, %v913_v0  ;;  %v2394_v7 = vpack.c.bf16 %v940_v61, %v941_v2  ;;  %v2410_v9 = vpack.c.bf16 %v910_v60, %v911_v1  ;;  %v2421_v60 = vld [vmem:[%s3805_s6] ss:$0 sm:$0xff] }
 0x15f   : > { %2736 = vmatprep.mubr.msk.bf16.mxu1 %vm3521_vm6, %v2390_v5  ;;  %2756 = vmatprep.mubr.msk.bf16.mxu0 %vm3527_vm8, %v2406_v6 }
 0x160   : > { %2737 = vmatmul.mubr.msk.bf16.vlgmr.msra.gmra.mxu1 %vm3535_vm10, %v2394_v7  ;;  %2757 = vmatmul.mubr.msk.bf16.vlgmr.msra.gmra.mxu0 %vm3548_vm12, %v2410_v9 }
 0x161   : > { %2761 = vmatpush3.bf16.msra.mxu1 %v3045_v18  ;;  %2781 = vmatpush3.bf16.msra.mxu0 %v3046_v19  ;;  %v3056_v18 = vld [vmem:[%s3804_s5 + $0x10] sm:$0xff]   ;;  %v3057_v19 = vld [vmem:[#allocation5 + $0x88] sm:$0xff]  }
 0x162   : > { %2776 = vmatprep.mubr.bf16.mxu1 %v1161_v13  ;;  %2762 = vmatprep.subr.bf16.mxu1 %v3047_v10 }
 0x163   : > { %2782 = vmatprep.subr.bf16.mxu0 %v3048_v12  ;;  %2796 = vmatprep.mubr.msk.bf16.mxu0 %vm3541_vm11, %v3562_v56  ;;  %v3055_v56 = vld [vmem:[#allocation5 + $0x90] sm:$0xff]  }
 0x165   : > { %2763 = vmatpush3.bf16.msra.mxu1 %v3047_v10  ;;  %2783 = vmatpush3.bf16.msra.mxu0 %v3048_v12 }
 0x166   : > { %2764 = vmatprep.subr.bf16.mxu1 %v3049_v38  ;;  %2784 = vmatprep.subr.bf16.mxu0 %v3050_v14 }
 0x169   : > { %2765 = vmatpush3.bf16.msra.mxu1 %v3049_v38  ;;  %2785 = vmatpush3.bf16.msra.mxu0 %v3050_v14 }
 0x16a   : > { %2766 = vmatprep.subr.bf16.mxu1 %v3051_v45  ;;  %2786 = vmatprep.subr.bf16.mxu0 %v3052_v15 }
 0x16d   : > { %2767 = vmatpush3.bf16.msra.mxu1 %v3051_v45  ;;  %2787 = vmatpush3.bf16.msra.mxu0 %v3052_v15 }
 0x16e   : > { %2768 = vmatprep.subr.bf16.mxu1 %v3053_v16  ;;  %2788 = vmatprep.subr.bf16.mxu0 %v3054_v17 }
 0x171   : > { %2769 = vmatpush3.bf16.msra.mxu1 %v3053_v16  ;;  %2789 = vmatpush3.bf16.msra.mxu0 %v3054_v17 }
 0x172   : > { %2770 = vmatprep.subr.bf16.mxu1 %v3055_v56  ;;  %2790 = vmatprep.subr.bf16.mxu0 %v3056_v18 }
 0x175   : > { %2771 = vmatpush3.bf16.msra.mxu1 %v3055_v56  ;;  %2791 = vmatpush3.bf16.msra.mxu0 %v3056_v18 }
 0x176   : > { %2772 = vmatprep.subr.bf16.mxu1 %v3057_v19  ;;  %2792 = vmatprep.subr.bf16.mxu0 %v3058_v20 }
 0x179   : > { %2773 = vmatpush3.bf16.msra.mxu1 %v3057_v19  ;;  %2793 = vmatpush3.bf16.msra.mxu0 %v3058_v20 }
 0x17a   : > { %2774 = vmatprep.subr.bf16.mxu1 %v3059_v21  ;;  %2794 = vmatprep.subr.bf16.mxu0 %v3060_v22 }
 0x17d   : > { %2775 = vmatpush3.bf16.msra.mxu1 %v3059_v21  ;;  %2795 = vmatpush3.bf16.msra.mxu0 %v3060_v22 }
 0x17e   : > { %2800 = vmatprep.subr.bf16.mxu1 %v3061_v24  ;;  %2820 = vmatprep.subr.bf16.mxu0 %v3062_v26 }
 0x180   : > { %2777 = vmatmul.mubr.bf16.vlgmr.msra.gmra.mxu1 %v1162_v23  ;;  %2797 = vmatmul.mubr.msk.bf16.vlgmr.msra.gmra.mxu0 %vm3541_vm11, %v3573_v63  ;;  %v3070_v63 = vld [vmem:[#allocation7 + $0x18] sm:$0xff]  }
 0x181   : > { %2801 = vmatpush3.bf16.msra.mxu1 %v3061_v24  ;;  %2821 = vmatpush3.bf16.msra.mxu0 %v3062_v26 }
 0x182   : > { %2802 = vmatprep.subr.bf16.mxu1 %v3063_v27  ;;  %2822 = vmatprep.subr.bf16.mxu0 %v3064_v28 }
 0x185   : > { %2803 = vmatpush3.bf16.msra.mxu1 %v3063_v27  ;;  %2823 = vmatpush3.bf16.msra.mxu0 %v3064_v28 }
 0x186   : > { %2804 = vmatprep.subr.bf16.mxu1 %v3065_v29  ;;  %2824 = vmatprep.subr.bf16.mxu0 %v3066_v30 }
 0x189   : > { %2805 = vmatpush3.bf16.msra.mxu1 %v3065_v29  ;;  %2825 = vmatpush3.bf16.msra.mxu0 %v3066_v30 }
 0x18a   : > { %2806 = vmatprep.subr.bf16.mxu1 %v3067_v31  ;;  %2826 = vmatprep.subr.bf16.mxu0 %v3068_v32 }
 0x18d   : > { %2807 = vmatpush3.bf16.msra.mxu1 %v3067_v31  ;;  %2827 = vmatpush3.bf16.msra.mxu0 %v3068_v32 }
 0x18e   : > { %2808 = vmatprep.subr.bf16.mxu1 %v3069_v46  ;;  %2828 = vmatprep.subr.bf16.mxu0 %v3070_v63 }
 0x191   : > { %2809 = vmatpush3.bf16.msra.mxu1 %v3069_v46  ;;  %2829 = vmatpush3.bf16.msra.mxu0 %v3070_v63 }
 0x192   : > { %2810 = vmatprep.subr.bf16.mxu1 %v3071_v33  ;;  %2830 = vmatprep.subr.bf16.mxu0 %v3072_v34 }
 0x195   : > { %2811 = vmatpush3.bf16.msra.mxu1 %v3071_v33  ;;  %2831 = vmatpush3.bf16.msra.mxu0 %v3072_v34 }
 0x196   : > { %2812 = vmatprep.subr.bf16.mxu1 %v3073_v35  ;;  %2832 = vmatprep.subr.bf16.mxu0 %v3074_v36 }
 0x199   : > { %2813 = vmatpush3.bf16.msra.mxu1 %v3073_v35  ;;  %2833 = vmatpush3.bf16.msra.mxu0 %v3074_v36 }
 0x19a   : > { %2814 = vmatprep.subr.bf16.mxu1 %v3075_v37  ;;  %2834 = vmatprep.subr.bf16.mxu0 %v3076_v39 }
 0x19d   : > { %2815 = vmatpush3.bf16.msra.mxu1 %v3075_v37  ;;  %2835 = vmatpush3.bf16.msra.mxu0 %v3076_v39  ;;  %v3108_v37 = vld [vmem:[#allocation8 + $0x80] sm:$0xff]  }
 0x19e   : > { %2840 = vmatprep.subr.bf16.mxu1 %v3645_v40 }
 0x220   : > { %v2738_v42 = vpop.f32.mrf.mxu1  ;;  %v2758_v43 = vpop.f32.mrf.mxu0 }
 0x221   : > { %v1155_v53 = vadd.f32 %v2758_v43, %v2738_v42  ;;  %v3078_v42 = vld [vmem:[#allocation7 + $0xb0] sm:$0xff]  }
 0x222   : > { %v1049_v44 = vpop.f32.mrf.mxu1  ;;  %v1146_v48 = vpop.f32.mrf.mxu0 }
 0x223   : > { %v1147_v57 = vadd.f32 %v1146_v48, %v1049_v44  ;;  %v3079_v44 = vld [vmem:[#allocation7 + $0xa8] sm:$0xff]   ;;  %v3080_v48 = vld [vmem:[#allocation7 + $0xa0] sm:$0xff]  }
 0x224   : > { %v2739_v49 = vpop.f32.mrf.mxu1  ;;  %v2759_v50 = vpop.f32.mrf.mxu0 }
 0x225   : > { %v1158_v0 = vadd.f32 %v2759_v50, %v2739_v49  ;;  %v3081_v49 = vld [vmem:[#allocation7 + $0x98] sm:$0xff]   ;;  %v3082_v50 = vld [vmem:[#allocation7 + $0x90] sm:$0xff]  }
 0x226   : > { %v1052_v51 = vpop.f32.mrf.mxu1  ;;  %v1149_v52 = vpop.f32.mrf.mxu0 }
 0x227   : > { %v1150_v9 = vadd.f32 %v1149_v52, %v1052_v51  ;;  %v3083_v51 = vld [vmem:[#allocation7 + $0x88] sm:$0xff]   ;;  %v3084_v52 = vld [vmem:[#allocation7 + $0x80] sm:$0xff]  }
 0x240   : > { %v2778_v54 = vpop.f32.mrf.mxu1  ;;  %v2798_v55 = vpop.f32.mrf.mxu0 }
 0x241   : > { %v1279_v58 = vadd.f32 %v2778_v54, %v1155_v53  ;;  %v1406_v5 = vadd.f32 %v2798_v55, %v2421_v60  ;;  %v3085_v53 = vld [vmem:[#allocation8 + $0x78] sm:$0xff]   ;;  %v3087_v55 = vld [vmem:[#allocation8 + $0x70] sm:$0xff]  }
 0x242   : > { %v1262_v61 = vpop.f32.mrf.mxu1  ;;  %v1397_v62 = vpop.f32.mrf.mxu0  ;;  %v3086_v54 = vld [vmem:[#allocation8 + $0x38] sm:$0xff]   ;;  %2860 = vmatprep.subr.bf16.mxu0 %v3085_v53 }
 0x243   : > { %v1277_v1 = vadd.f32 %v1262_v61, %v1147_v57  ;;  %v1290_v4 = vadd.f32 %v2420_v59, %v1279_v58  ;;  %v1398_v12 = vadd.f32 %v2421_v60, %v1397_v62  ;;  %v3088_v57 = vld [vmem:[#allocation8 + $0x30] sm:$0xff]   ;;  %v3089_v58 = vld [vmem:[#allocation8 + $0x68] sm:$0xff]   ;;  %v3092_v61 = vld [vmem:[#allocation8 + $0x20] sm:$0xff]  }
 0x244   : > { %v2779_v2 = vpop.f32.mrf.mxu1  ;;  %v2799_v3 = vpop.f32.mrf.mxu0  ;;  %v3093_v62 = vld [vmem:[#allocation8 + $0x58] sm:$0xff]  }
 0x245   : > { %v1288_v6 = vadd.f32 %v2420_v59, %v1277_v1  ;;  %v1280_v7 = vadd.f32 %v2779_v2, %v1158_v0  ;;  %v1409_v38 = vadd.f32 %v2799_v3, %v2421_v60  ;;  %v3654_v15 = vadd.f32 %v1406_v5, %v1290_v4  ;;  %v3094_v0 = vld [vmem:[#allocation8 + $0x18] sm:$0xff]   ;;  %v3095_v1 = vld [vmem:[#allocation8 + $0x50] sm:$0xff]   ;;  %v3097_v3 = vld [vmem:[#allocation8 + $0x48] sm:$0xff]  }
 0x246   : > { %v1265_v10 = vpop.f32.mrf.mxu1  ;;  %v1400_v14 = vpop.f32.mrf.mxu0  ;;  %v3096_v2 = vld [vmem:[#allocation8 + $0x10] sm:$0xff]   ;;  %v3098_v4 = vld [vmem:[#allocation8 + $0x8] sm:$0xff]   ;;  %v3099_v5 = vld [vmem:[#allocation8 + $0x40] sm:$0xff]  }
 0x247   : > { %v1291_v13 = vadd.f32 %v2420_v59, %v1280_v7  ;;  %v1278_v45 = vadd.f32 %v1265_v10, %v1150_v9  ;;  %v3656_v16 = vadd.f32 %v1398_v12, %v1288_v6  ;;  %v1401_v18 = vadd.f32 %v2421_v60, %v1400_v14  ;;  %v3091_v60 = vld [vmem:[#allocation8 + $0x60] sm:$0xff]   ;;  %v3101_v7 = vld [vmem:[#allocation8 + $0xb8] sm:$0xff]  }
 0x248   : > { %v1418_v22 = vrot.slane %v3654_v15, 4  ;;  %v1453_v23 = vrot.slane %v3654_v15, 6  ;;  %v3100_v6 = vld [vmem:[#allocation8] sm:$0xff]  }
 0x249   : > { %v3658_v17 = vadd.f32 %v1409_v38, %v1291_v13  ;;  %v1289_v56 = vadd.f32 %v2420_v59, %v1278_v45  ;;  %v1416_v24 = vrot.slane %v3656_v16, 4  ;;  %v1451_v26 = vrot.slane %v3656_v16, 6  ;;  %v3090_v59 = vld [vmem:[#allocation8 + $0x28] sm:$0xff]  }
 0x24b   : > { %v1419_v19 = vrot.slane %v3658_v17, 4  ;;  %v1454_v20 = vrot.slane %v3658_v17, 6  ;;  %v3662_v21 = vadd.f32 %v1401_v18, %v1289_v56 }
 0x24d   : > { %v1417_v27 = vrot.slane %v3662_v21, 4  ;;  %v1452_v28 = vrot.slane %v3662_v21, 6  ;;  %v1458_v29 = vsel %vm514_vm1, %v1454_v20, %v1451_v26  ;;  %v1424_v11 = vsel %vm1420_vm13, %v1419_v19, %v1416_v24 }
 0x24e   : > { %v1455_v30 = vsel %vm514_vm1, %v1453_v23, %v1454_v20  ;;  %v1421_v31 = vsel %vm1420_vm13, %v1418_v22, %v1419_v19  ;;  %v1676_v43 = vpack.c.bf16 %v3662_v21, %v3656_v16 }
 0x24f   : > { %v1457_v32 = vsel %vm514_vm1, %v1451_v26, %v1452_v28  ;;  %v1423_v46 = vsel %vm1420_vm13, %v1416_v24, %v1417_v27  ;;  %v1456_v63 = vsel %vm514_vm1, %v1452_v28, %v1453_v23  ;;  %v1422_v33 = vsel %vm1420_vm13, %v1417_v27, %v1418_v22  ;;  %v2476_v26 = vld [vmem:[%s3807_s8] ss:$0 sm:$0xff] }
 0x250   : > { %v2446_v34 = vpack.c.bf16 %v1457_v32, %v1458_v29  ;;  %v2462_v35 = vpack.c.bf16 %v1423_v46, %v1424_v11  ;;  %v2450_v36 = vpack.c.bf16 %v1455_v30, %v1456_v63  ;;  %v2466_v39 = vpack.c.bf16 %v1421_v31, %v1422_v33 }
 0x252   : > { %2816 = vmatprep.mubr.msk.bf16.mxu1 %vm3527_vm8, %v2446_v34  ;;  %2836 = vmatprep.mubr.msk.bf16.mxu0 %vm3686_vm0, %v2462_v35 }
 0x253   : > { %2817 = vmatmul.mubr.msk.bf16.vlgmr.msra.gmra.mxu1 %vm3548_vm12, %v2450_v36  ;;  %2837 = vmatmul.mubr.msk.bf16.vlgmr.msra.gmra.mxu0 %vm3695_vm2, %v2466_v39 }
 0x254   : > { %2841 = vmatpush3.bf16.msra.mxu1 %v3645_v40  ;;  %2856 = vmatprep.mubr.bf16.mxu1 %v1676_v43  ;;  %v1677_v40 = vpack.c.bf16 %v3658_v17, %v3654_v15 }
 0x255   : > { %2842 = vmatprep.subr.bf16.mxu1 %v3078_v42  ;;  %2861 = vmatpush3.bf16.msra.mxu0 %v3085_v53 }
 0x256   : > { %2862 = vmatprep.subr.bf16.mxu0 %v3087_v55 }
 0x258   : > { %2843 = vmatpush3.bf16.msra.mxu1 %v3078_v42 }
 0x259   : > { %2844 = vmatprep.subr.bf16.mxu1 %v3079_v44  ;;  %2863 = vmatpush3.bf16.msra.mxu0 %v3087_v55 }
 0x25a   : > { %2864 = vmatprep.subr.bf16.mxu0 %v3089_v58 }
 0x25c   : > { %2845 = vmatpush3.bf16.msra.mxu1 %v3079_v44 }
 0x25d   : > { %2846 = vmatprep.subr.bf16.mxu1 %v3080_v48  ;;  %2865 = vmatpush3.bf16.msra.mxu0 %v3089_v58 }
 0x25e   : > { %2866 = vmatprep.subr.bf16.mxu0 %v3091_v60 }
 0x260   : > { %2847 = vmatpush3.bf16.msra.mxu1 %v3080_v48 }
 0x261   : > { %2848 = vmatprep.subr.bf16.mxu1 %v3081_v49  ;;  %2867 = vmatpush3.bf16.msra.mxu0 %v3091_v60 }
 0x262   : > { %2868 = vmatprep.subr.bf16.mxu0 %v3093_v62 }
 0x264   : > { %2849 = vmatpush3.bf16.msra.mxu1 %v3081_v49 }
 0x265   : > { %2850 = vmatprep.subr.bf16.mxu1 %v3082_v50  ;;  %2869 = vmatpush3.bf16.msra.mxu0 %v3093_v62 }
 0x266   : > { %2870 = vmatprep.subr.bf16.mxu0 %v3095_v1 }
 0x268   : > { %2851 = vmatpush3.bf16.msra.mxu1 %v3082_v50 }
 0x269   : > { %2852 = vmatprep.subr.bf16.mxu1 %v3083_v51  ;;  %2871 = vmatpush3.bf16.msra.mxu0 %v3095_v1 }
 0x26a   : > { %2872 = vmatprep.subr.bf16.mxu0 %v3097_v3 }
 0x26c   : > { %2853 = vmatpush3.bf16.msra.mxu1 %v3083_v51 }
 0x26d   : > { %2854 = vmatprep.subr.bf16.mxu1 %v3084_v52  ;;  %2873 = vmatpush3.bf16.msra.mxu0 %v3097_v3 }
 0x26e   : > { %2874 = vmatprep.subr.bf16.mxu0 %v3099_v5 }
 0x270   : > { %2855 = vmatpush3.bf16.msra.mxu1 %v3084_v52 }
 0x271   : > { %2880 = vmatprep.subr.bf16.mxu1 %v3086_v54  ;;  %2875 = vmatpush3.bf16.msra.mxu0 %v3099_v5 }
 0x272   : > { %2900 = vmatprep.subr.bf16.mxu0 %v3101_v7 }
 0x273   : > { %2857 = vmatmul.mubr.bf16.vlgmr.msra.gmra.mxu1 %v1677_v40 }
 0x274   : > { %2881 = vmatpush3.bf16.msra.mxu1 %v3086_v54 }
 0x275   : > { %2882 = vmatprep.subr.bf16.mxu1 %v3088_v57 }
 0x278   : > { %2883 = vmatpush3.bf16.msra.mxu1 %v3088_v57 }
 0x279   : > { %2884 = vmatprep.subr.bf16.mxu1 %v3090_v59 }
 0x27c   : > { %2885 = vmatpush3.bf16.msra.mxu1 %v3090_v59 }
 0x27d   : > { %2886 = vmatprep.subr.bf16.mxu1 %v3092_v61 }
 0x280   : > { %2887 = vmatpush3.bf16.msra.mxu1 %v3092_v61  ;;  %v3102_v61 = vld [vmem:[#allocation8 + $0xb0] sm:$0xff]  }
 0x281   : > { %2888 = vmatprep.subr.bf16.mxu1 %v3094_v0 }
 0x284   : > { %2889 = vmatpush3.bf16.msra.mxu1 %v3094_v0  ;;  %v3104_v0 = vld [vmem:[#allocation8 + $0xa0] sm:$0xff]  }
 0x285   : > { %2890 = vmatprep.subr.bf16.mxu1 %v3096_v2 }
 0x288   : > { %2891 = vmatpush3.bf16.msra.mxu1 %v3096_v2 }
 0x289   : > { %2892 = vmatprep.subr.bf16.mxu1 %v3098_v4 }
 0x28c   : > { %2893 = vmatpush3.bf16.msra.mxu1 %v3098_v4 }
 0x28d   : > { %2894 = vmatprep.subr.bf16.mxu1 %v3100_v6 }
 0x290   : > { %2895 = vmatpush3.bf16.msra.mxu1 %v3100_v6 }
 0x313   : > { %v2818_v9 = vpop.f32.mrf.mxu1  ;;  %v2838_v10 = vpop.f32.mrf.mxu0 }
 0x314   : > { %v1670_v56 = vadd.f32 %v2838_v10, %v2818_v9 }
 0x315   : > { %v1564_v12 = vpop.f32.mrf.mxu1  ;;  %v1661_v13 = vpop.f32.mrf.mxu0 }
 0x316   : > { %v1662_v19 = vadd.f32 %v1661_v13, %v1564_v12  ;;  %v2517_v13 = vld [vmem:[%s3809_s10] ss:$0 sm:$0xff] }
 0x317   : > { %v2819_v38 = vpop.f32.mrf.mxu1  ;;  %v2839_v14 = vpop.f32.mrf.mxu0 }
 0x318   : > { %v1673_v24 = vadd.f32 %v2839_v14, %v2819_v38 }
 0x319   : > { %v1567_v45 = vpop.f32.mrf.mxu1  ;;  %v1664_v20 = vpop.f32.mrf.mxu0 }
 0x31a   : > { %v1665_v29 = vadd.f32 %v1664_v20, %v1567_v45 }
 0x333   : > { %v2858_v18 = vpop.f32.mrf.mxu1 }
 0x334   : > { %v1794_v22 = vadd.f32 %v2858_v18, %v1670_v56 }
 0x335   : > { %v1777_v23 = vpop.f32.mrf.mxu1 }
 0x336   : > { %v1792_v27 = vadd.f32 %v1777_v23, %v1662_v19  ;;  %v1805_v30 = vadd.f32 %v2476_v26, %v1794_v22 }
 0x337   : > { %v2859_v28 = vpop.f32.mrf.mxu1 }
 0x338   : > { %v1795_v11 = vadd.f32 %v2859_v28, %v1673_v24  ;;  %v1803_v31 = vadd.f32 %v2476_v26, %v1792_v27  ;;  %v1809_v36 = vrot.slane %v1805_v30, 4  ;;  %v1839_v39 = vrot.slane %v1805_v30, 6 }
 0x339   : > { %v1780_v32 = vpop.f32.mrf.mxu1 }
 0x33a   : > { %v1806_v46 = vadd.f32 %v2476_v26, %v1795_v11  ;;  %v1793_v63 = vadd.f32 %v1780_v32, %v1665_v29  ;;  %v1807_v42 = vrot.slane %v1803_v31, 4  ;;  %v1837_v43 = vrot.slane %v1803_v31, 6 }
 0x33c   : > { %v1810_v33 = vrot.slane %v1806_v46, 4  ;;  %v1840_v34 = vrot.slane %v1806_v46, 6  ;;  %v1804_v35 = vadd.f32 %v2476_v26, %v1793_v63  ;;  %v2063_v1 = vpack.c.bf16 %v1806_v46, %v1805_v30 }
 0x33e   : > { %v1808_v44 = vrot.slane %v1804_v35, 4  ;;  %v1838_v48 = vrot.slane %v1804_v35, 6  ;;  %v1811_v49 = vsel %vm1420_vm13, %v1809_v36, %v1810_v33  ;;  %v1841_v50 = vsel %vm514_vm1, %v1839_v39, %v1840_v34 }
 0x33f   : > { %v1844_v51 = vsel %vm514_vm1, %v1840_v34, %v1837_v43  ;;  %v1814_v52 = vsel %vm1420_vm13, %v1810_v33, %v1807_v42  ;;  %v2062_v62 = vpack.c.bf16 %v1804_v35, %v1803_v31 }
 0x340   : > { %v1812_v40 = vsel %vm1420_vm13, %v1808_v44, %v1809_v36  ;;  %v1842_v53 = vsel %vm514_vm1, %v1838_v48, %v1839_v39  ;;  %v1843_v54 = vsel %vm514_vm1, %v1837_v43, %v1838_v48  ;;  %v1813_v55 = vsel %vm1420_vm13, %v1807_v42, %v1808_v44 }
 0x341   : > { %v2487_v57 = vpack.c.bf16 %v1843_v54, %v1844_v51  ;;  %v2503_v58 = vpack.c.bf16 %v1813_v55, %v1814_v52  ;;  %v2491_v59 = vpack.c.bf16 %v1841_v50, %v1842_v53  ;;  %v2507_v60 = vpack.c.bf16 %v1811_v49, %v1812_v40 }
 0x343   : > { %2876 = vmatprep.mubr.msk.bf16.mxu0 %vm3527_vm8, %v2487_v57  ;;  %2896 = vmatprep.mubr.msk.bf16.mxu1 %vm3686_vm0, %v2503_v58 }
 0x344   : > { %2877 = vmatmul.mubr.msk.bf16.vlgmr.msra.gmra.mxu0 %vm3548_vm12, %v2491_v59  ;;  %2897 = vmatmul.mubr.msk.bf16.vlgmr.msra.gmra.mxu1 %vm3695_vm2, %v2507_v60 }
 0x345   : > { %2901 = vmatpush3.bf16.msra.mxu0 %v3101_v7  ;;  %2916 = vmatprep.mubr.bf16.mxu0 %v2062_v62 }
 0x346   : > { %2902 = vmatprep.subr.bf16.mxu0 %v3102_v61 }
 0x349   : > { %2903 = vmatpush3.bf16.msra.mxu0 %v3102_v61 }
 0x34a   : > { %2904 = vmatprep.subr.bf16.mxu0 %v3103_v8 }
 0x34d   : > { %2905 = vmatpush3.bf16.msra.mxu0 %v3103_v8 }
 0x34e   : > { %2906 = vmatprep.subr.bf16.mxu0 %v3104_v0 }
 0x351   : > { %2907 = vmatpush3.bf16.msra.mxu0 %v3104_v0 }
 0x352   : > { %2908 = vmatprep.subr.bf16.mxu0 %v3105_v41 }
 0x355   : > { %2909 = vmatpush3.bf16.msra.mxu0 %v3105_v41 }
 0x356   : > { %2910 = vmatprep.subr.bf16.mxu0 %v3106_v25 }
 0x359   : > { %2911 = vmatpush3.bf16.msra.mxu0 %v3106_v25 }
 0x35a   : > { %2912 = vmatprep.subr.bf16.mxu0 %v3107_v47 }
 0x35d   : > { %2913 = vmatpush3.bf16.msra.mxu0 %v3107_v47 }
 0x35e   : > { %2914 = vmatprep.subr.bf16.mxu0 %v3108_v37 }
 0x361   : > { %2915 = vmatpush3.bf16.msra.mxu0 %v3108_v37 }
 0x364   : > { %2917 = vmatmul.mubr.bf16.vlgmr.msra.gmra.mxu0 %v2063_v1 }
 0x404   : > { %v2878_v2 = vpop.f32.mrf.mxu0  ;;  %v2898_v3 = vpop.f32.mrf.mxu1 }
 0x405   : > { %v2056_v10 = vadd.f32 %v2898_v3, %v2878_v2 }
 0x406   : > { %v1950_v4 = vpop.f32.mrf.mxu0  ;;  %v2047_v5 = vpop.f32.mrf.mxu1 }
 0x407   : > { %v2048_v38 = vadd.f32 %v2047_v5, %v1950_v4 }
 0x408   : > { %v2879_v6 = vpop.f32.mrf.mxu0  ;;  %v2899_v7 = vpop.f32.mrf.mxu1 }
 0x409   : > { %v2059_v18 = vadd.f32 %v2899_v7, %v2879_v6 }
 0x40a   : > { %v1953_v9 = vpop.f32.mrf.mxu0  ;;  %v2050_v45 = vpop.f32.mrf.mxu1 }
 0x40b   : > { %v2051_v23 = vadd.f32 %v2050_v45, %v1953_v9 }
 0x424   : > { %v2918_v12 = vpop.f32.mrf.mxu0 }
 0x425   : > { %v2180_v14 = vadd.f32 %v2918_v12, %v2056_v10 }
 0x426   : > { %v2163_v56 = vpop.f32.mrf.mxu0 }
 0x427   : > { %v2191_v19 = vadd.f32 %v2517_v13, %v2180_v14  ;;  %v2178_v20 = vadd.f32 %v2163_v56, %v2048_v38 }
 0x428   : > { %v2919_v22 = vpop.f32.mrf.mxu0 }
 0x429   : > { %v2195_v24 = vadd.f32 %v2191_v19, %v3654_v15  ;;  %v2189_v26 = vadd.f32 %v2517_v13, %v2178_v20  ;;  %v2181_v27 = vadd.f32 %v2919_v22, %v2059_v18 }
 0x42a   : > { %v2166_v28 = vpop.f32.mrf.mxu0 }
 0x42b   : > { %2199 = vst [vmem:[%s439_s16 + $0x10] sm:$0xff] %v2195_v24  ;;  %v2193_v29 = vadd.f32 %v2189_v26, %v3656_v16  ;;  %v2192_v11 = vadd.f32 %v2517_v13, %v2181_v27  ;;  %v2179_v30 = vadd.f32 %v2166_v28, %v2051_v23 }
 0x42d   : > { %2197 = vst [vmem:[%s439_s16] sm:$0xff] %v2193_v29  ;;  %v2196_v31 = vadd.f32 %v2192_v11, %v3658_v17  ;;  %v2190_v32 = vadd.f32 %v2517_v13, %v2179_v30 }
 0x42f   : > { %2200 = vst [vmem:[%s439_s16 + $0x18] sm:$0xff] %v2196_v31  ;;  %v2194_v15 = vadd.f32 %v2190_v32, %v3662_v21 }
 0x431   : > { %2198 = vst [vmem:[%s439_s16 + $0x8] sm:$0xff] %v2194_v15 }
 0x432   : > { %3226 = shalt.err (!%p3223_p11)
}
 0x433   : > { %s3227_s19 = scalar_lea.hbm %s3754_s25, 512  ;;  %s3231_s24 = scalar_lea.hbm %s3810_s11, 1024 }
 0x434   : > { %p3228_p0 = scmp.ne.s32.totalorder %s3754_s25, %s3227_s19  ;;  %p3232_p3 = scmp.lt.s32.totalorder %s3754_s25, %s3810_s11 }
 0x435   : > { %p3233_p10 = scmp.lt.s32.totalorder %s3231_s24, %s3227_s19 }
 0x436   : > { %p3229_p2 = pnand %p3228_p0, %p3395_p5 }
 0x437   : > { %p3234_p9 = por %p3233_p10, %p3232_p3 }
 0x438   : > { %p3230_p1 = pneg %p3229_p2 }
 0x43a   : > { %p3235_p12 = pnand %p3234_p9, %p3230_p1 }
 0x43c   : > { %3238 = shalt.err (!%p3235_p12)
}
 0x43d   : > { %s3295_s30 = smov 128   ;;  %s3296_s12 = smov 8  }
 0x43e   : > { %2936 = dma.vmem_to_hbm [thread:$0]  (%p3395_p5), %s3749_s22, 512, %s3754_s25, %s3759_s21, %s3295_s30, %s3295_s30, %s3296_s12  }
 0x43f PF: > { %p2963_p13 = scmp.ge.s32.totalorder %s3285_s20, 2  ;;  %s2230_s26 = sand.u32 1, %s3273_s17  }
 0x440   : > { %s2231_s15 = scalar_lea.sflag [#allocation4], %s2230_s26 }
 0x441   : > { %p2952_p4 = pnand %p2963_p13, %p3399_p6 }
 0x443   : > { %p2953_p7 = pneg %p2952_p4 }
 0x445   : > { %3268 = dma.done.wait (%p2953_p7), %s2231_s15, 512  }
 0x446   : > { %3270 = vsyncadd (%p2953_p7), %s2231_s15, 4294966784  ;;  %s3832_s19 = sld [smem:[#allocation15_spill]]  ;;  %p24_p8 = scmp.ge.s32.totalorder %s3382_s23, 4  }
 0x447   : > { %s3833_s14 = sld [smem:[#allocation16_spill]]  ;;  %s3834_s17 = smov %s3277_s18 }
 0x448   : > { %s3837_s20 = smov %s3382_s23 }
 0x449   :  { %26 = sbr.rel (!%p24_p8) target bundleno = 6 (0x6), region = 124 }
 0x44c   : > { %s3835_s18 = smov %s3832_s19 }
 0x44d   : > { %s3836_s19 = smov %s3833_s14 }
 0x44e   :  { %2236 = vsyncpa [#allocation3], 1 }
 0x44f   :  { %2238 = vsyncpa [#allocation3 + $0x1], 1 }
 0x450   :  { %2239 = vsyncpa [#allocation6], 1 }
 0x451   :  { %2240 = vsyncpa [#allocation9], 1 }
 0x452   :  { %2241 = vsyncpa [#allocation4], 1 }
 0x453   :  { %2243 = vsyncpa [#allocation4 + $0x1], 1 }

</bundles_post_ra>
